<compile_context>
chip_gen: v7x
topology: tpu7x:2x2x1
jax: 0.10.0
libtpu: 0.0.40
codegen_flags: <defaults>
</compile_context>

<pallas_src>
import jax
import jax.numpy as jnp
from jax.experimental import pallas as pl
from jax.experimental.pallas import tpu as pltpu


# ---------------------------------------------------------------------------
# Fused Pallas kernel (all LSTM layers + last-timestep + FC)
# ---------------------------------------------------------------------------
def make_fused_lstm_fc_kernel(B, T, H, num_layers):
    def kernel(x_ref, *refs):
        # refs layout: [wih_0, whh_0, b_0, ..., wih_{L-1}, whh_{L-1}, b_{L-1},
        #               fc_w, fc_b, out_ref, hseq_scratch]
        hseq_scr = refs[-1]
        out_ref = refs[-2]
        fc_b_ref = refs[-3]
        fc_w_ref = refs[-4]
        layer_refs = refs[:-4]

        h_last = None
        for layer in range(num_layers):
            wih = layer_refs[3 * layer][...]        # (Din, 4H)
            whh = layer_refs[3 * layer + 1][...]    # (H, 4H)
            bias = layer_refs[3 * layer + 2][...]   # (1, 4H)

            # Time-major (T*B, Din) input for this layer.
            seq = x_ref[...] if layer == 0 else hseq_scr[...]

            # Hoisted input projection for ALL timesteps at once + bias folded in
            # (one MXU matmul per layer; bias broadcast happens exactly once).
            proj = jnp.dot(seq, wih, preferred_element_type=jnp.float32) + bias  # (T*B, 4H)

            h = jnp.zeros((B, H), jnp.float32)
            c = jnp.zeros((B, H), jnp.float32)

            # Serial recurrence: only h @ W_hh and the gate elementwise math remain here.
            # Statically unrolled (T small) -> full scheduler visibility, static slices.
            for t in range(T):
                gates = proj[t * B:(t + 1) * B, :] + jnp.dot(
                    h, whh, preferred_element_type=jnp.float32)            # (B, 4H)
                # PyTorch gate order: input, forget, cell(g), output
                i_g = jax.nn.sigmoid(gates[:, 0 * H:1 * H])
                f_g = jax.nn.sigmoid(gates[:, 1 * H:2 * H])
                g_g = jnp.tanh(gates[:, 2 * H:3 * H])
                o_g = jax.nn.sigmoid(gates[:, 3 * H:4 * H])
                c = f_g * c + i_g * g_g
                h = o_g * jnp.tanh(c)
                if layer < num_layers - 1:
                    # Stash the full hidden sequence (time-major) for the next layer; stays in VMEM.
                    hseq_scr[t * B:(t + 1) * B, :] = h
                # TODO(synk): inter-layer dropout (training-mode only) omitted — identity at inference.

            h_last = h  # only the final timestep of the last layer is needed downstream

        # nn.Dropout in eval mode is identity. FC into a lane-dense padded slab (single store).
        out_ref[...] = (
            jnp.dot(h_last, fc_w_ref[...], preferred_element_type=jnp.float32)
            + fc_b_ref[...]
        ).astype(out_ref.dtype)

    return kernel


# ---------------------------------------------------------------------------
# Wrapper
# ---------------------------------------------------------------------------
def lstm_model_forward(x, params):
    """x: (B, T, D) float32; params as produced by init_params. Returns (B, O)."""
    B, T, D = x.shape
    H = params["lstm"][0][1].shape[0]
    L = len(params["lstm"])
    O = params["fc_w_t"].shape[1]
    O_pad = max(128, ((O + 127) // 128) * 128)  # lane-dense output slab

    # Time-major flatten once in XLA so rows t*B:(t+1)*B hold timestep t for all batches.
    x_tm = jnp.swapaxes(x, 0, 1).reshape(T * B, D)

    # Zero-pad FC weight/bias to O_pad lanes (padded columns produce zeros, sliced off below).
    fc_w_pad = jnp.zeros((H, O_pad), jnp.float32).at[:, :O].set(params["fc_w_t"])
    fc_b_pad = jnp.zeros((1, O_pad), jnp.float32).at[:, :O].set(params["fc_b"])

    inputs = [x_tm]
    in_specs = [pl.BlockSpec((T * B, D), lambda: (0, 0))]
    for (w_ih_t, w_hh_t, b) in params["lstm"]:
        inputs += [w_ih_t, w_hh_t, b]
        in_specs += [
            pl.BlockSpec(w_ih_t.shape, lambda: (0, 0)),
            pl.BlockSpec(w_hh_t.shape, lambda: (0, 0)),
            pl.BlockSpec(b.shape, lambda: (0, 0)),
        ]
    inputs += [fc_w_pad, fc_b_pad]
    in_specs += [
        pl.BlockSpec(fc_w_pad.shape, lambda: (0, 0)),
        pl.BlockSpec(fc_b_pad.shape, lambda: (0, 0)),
    ]

    kernel = make_fused_lstm_fc_kernel(B, T, H, L)
    out_pad = pl.pallas_call(
        kernel,
        in_specs=in_specs,
        out_specs=pl.BlockSpec((B, O_pad), lambda: (0, 0)),
        out_shape=jax.ShapeDtypeStruct((B, O_pad), jnp.float32),
        scratch_shapes=[pltpu.VMEM((T * B, H), jnp.float32)],  # inter-layer hidden sequence
    )(*inputs)
    return out_pad[:, :O]


# ---------------------------------------------------------------------------
# Deterministic parameter init (PyTorch-style U(-1/sqrt(H), 1/sqrt(H)))
# ---------------------------------------------------------------------------
def init_params(key, input_dim, hidden_dim, num_layers, output_dim):
    params = {"lstm": []}
    bound = 1.0 / jnp.sqrt(hidden_dim)
    for layer in range(num_layers):
        in_dim = input_dim if layer == 0 else hidden_dim
        key, k1, k2, k3, k4 = jax.random.split(key, 5)
        w_ih = jax.random.uniform(k1, (4 * hidden_dim, in_dim), jnp.float32, -bound, bound)
        w_hh = jax.random.uniform(k2, (4 * hidden_dim, hidden_dim), jnp.float32, -bound, bound)
        b_ih = jax.random.uniform(k3, (4 * hidden_dim,), jnp.float32, -bound, bound)
        b_hh = jax.random.uniform(k4, (4 * hidden_dim,), jnp.float32, -bound, bound)
        params["lstm"].append((w_ih.T, w_hh.T, (b_ih + b_hh).reshape(1, -1)))
    key, k5, k6 = jax.random.split(key, 3)
    fbound = 1.0 / jnp.sqrt(hidden_dim)
    fc_w = jax.random.uniform(k5, (output_dim, hidden_dim), jnp.float32, -fbound, fbound)
    fc_b = jax.random.uniform(k6, (output_dim,), jnp.float32, -fbound, fbound)
    params["fc_w_t"] = fc_w.T
    params["fc_b"] = fc_b.reshape(1, -1)
    return params


# Pure-JAX reference (mirrors torch.nn.LSTM semantics) for a sanity check.
def reference_forward(x, params):
    h_seq = x
    for (w_ih_t, w_hh_t, b) in params["lstm"]:
        B, T, _ = h_seq.shape
        H = w_hh_t.shape[0]

        def step(carry, x_t):
            h, c = carry
            gates = x_t @ w_ih_t + h @ w_hh_t + b[0]
            i, f, g, o = jnp.split(gates, 4, axis=-1)
            i, f, o = jax.nn.sigmoid(i), jax.nn.sigmoid(f), jax.nn.sigmoid(o)
            g = jnp.tanh(g)
            c = f * c + i * g
            h = o * jnp.tanh(c)
            return (h, c), h

        init = (jnp.zeros((B, H), jnp.float32), jnp.zeros((B, H), jnp.float32))
        _, hs = jax.lax.scan(step, init, jnp.swapaxes(h_seq, 0, 1))
        h_seq = jnp.swapaxes(hs, 0, 1)
    return h_seq[:, -1, :] @ params["fc_w_t"] + params["fc_b"][0]


if __name__ == "__main__":
    B, T, D, H, L, O = 2, 8, 16, 32, 2, 4

    key = jax.random.PRNGKey(0)
    kx, kp = jax.random.split(key)
    x = jax.random.normal(kx, (B, T, D), jnp.float32)
    params = init_params(kp, D, H, L, O)

    out = lstm_model_forward(x, params)
    out = jax.block_until_ready(out)

    ref = reference_forward(x, params)
    assert out.shape == (B, O)
    assert jnp.allclose(out, ref, atol=1e-5, rtol=1e-5)

    print("KERNEL_OK")
</pallas_src>

<mosaic_0001>
module attributes {stable_mosaic.version = 11 : i64} {
  func.func @kernel(%arg0: memref<16x16xf32, #tpu.memory_space<vmem>>, %arg1: memref<16x128xf32, #tpu.memory_space<vmem>>, %arg2: memref<32x128xf32, #tpu.memory_space<vmem>>, %arg3: memref<1x128xf32, #tpu.memory_space<vmem>>, %arg4: memref<32x128xf32, #tpu.memory_space<vmem>>, %arg5: memref<32x128xf32, #tpu.memory_space<vmem>>, %arg6: memref<1x128xf32, #tpu.memory_space<vmem>>, %arg7: memref<32x128xf32, #tpu.memory_space<vmem>>, %arg8: memref<1x128xf32, #tpu.memory_space<vmem>>, %arg9: memref<2x128xf32, #tpu.memory_space<vmem>>, %arg10: memref<16x32xf32, #tpu.memory_space<vmem>>) attributes {dimension_semantics = [], scalar_prefetch = 0 : i64, scratch_operands = 1 : i64, tpu.core_type = #tpu.core_type<tc>} {
    %c0 = arith.constant 0 : index
    %c0_0 = arith.constant 0 : index
    %0 = vector.load %arg1[%c0, %c0_0] : memref<16x128xf32, #tpu.memory_space<vmem>>, vector<16x128xf32>
    %c0_1 = arith.constant 0 : index
    %c0_2 = arith.constant 0 : index
    %1 = vector.load %arg2[%c0_1, %c0_2] : memref<32x128xf32, #tpu.memory_space<vmem>>, vector<32x128xf32>
    %c0_3 = arith.constant 0 : index
    %c0_4 = arith.constant 0 : index
    %2 = vector.load %arg3[%c0_3, %c0_4] : memref<1x128xf32, #tpu.memory_space<vmem>>, vector<1x128xf32>
    %c0_5 = arith.constant 0 : index
    %c0_6 = arith.constant 0 : index
    %3 = vector.load %arg0[%c0_5, %c0_6] : memref<16x16xf32, #tpu.memory_space<vmem>>, vector<16x16xf32>
    %cst = arith.constant dense<0.000000e+00> : vector<16x128xf32>
    %4 = tpu.matmul %3, %0, %cst {dimension_numbers = #tpu.dot_dimension_numbers<[1], [0], [0], [1], [0, 0, 1, 1], [], []>} : vector<16x16xf32>, vector<16x128xf32>, vector<16x128xf32> -> vector<16x128xf32>
    %5 = vector.broadcast %2 : vector<1x128xf32> to vector<16x128xf32>
    %6 = arith.addf %4, %5 : vector<16x128xf32>
    %cst_7 = arith.constant 0.000000e+00 : f32
    %7 = vector.broadcast %cst_7 : f32 to vector<2x32xf32>
    %cst_8 = arith.constant 0.000000e+00 : f32
    %8 = vector.broadcast %cst_8 : f32 to vector<2x32xf32>
    %9 = vector.extract_strided_slice %6 {offsets = [0, 0], sizes = [2, 128], strides = [1, 1]} : vector<16x128xf32> to vector<2x128xf32>
    %cst_9 = arith.constant dense<0.000000e+00> : vector<2x128xf32>
    %10 = tpu.matmul %7, %1, %cst_9 {dimension_numbers = #tpu.dot_dimension_numbers<[1], [0], [0], [1], [0, 0, 1, 1], [], []>} : vector<2x32xf32>, vector<32x128xf32>, vector<2x128xf32> -> vector<2x128xf32>
    %11 = arith.addf %9, %10 : vector<2x128xf32>
    %12 = vector.extract_strided_slice %11 {offsets = [0, 0], sizes = [2, 32], strides = [1, 1]} : vector<2x128xf32> to vector<2x32xf32>
    %13 = arith.negf %12 : vector<2x32xf32>
    %14 = math.exp %13 : vector<2x32xf32>
    %cst_10 = arith.constant 1.000000e+00 : f32
    %15 = vector.broadcast %cst_10 : f32 to vector<2x32xf32>
    %16 = arith.addf %15, %14 : vector<2x32xf32>
    %17 = arith.divf %15, %16 : vector<2x32xf32>
    %18 = vector.extract_strided_slice %11 {offsets = [0, 32], sizes = [2, 32], strides = [1, 1]} : vector<2x128xf32> to vector<2x32xf32>
    %19 = arith.negf %18 : vector<2x32xf32>
    %20 = math.exp %19 : vector<2x32xf32>
    %cst_11 = arith.constant 1.000000e+00 : f32
    %21 = vector.broadcast %cst_11 : f32 to vector<2x32xf32>
    %22 = arith.addf %21, %20 : vector<2x32xf32>
    %23 = arith.divf %21, %22 : vector<2x32xf32>
    %24 = vector.extract_strided_slice %11 {offsets = [0, 64], sizes = [2, 32], strides = [1, 1]} : vector<2x128xf32> to vector<2x32xf32>
    %25 = math.tanh %24 : vector<2x32xf32>
    %26 = vector.extract_strided_slice %11 {offsets = [0, 96], sizes = [2, 32], strides = [1, 1]} : vector<2x128xf32> to vector<2x32xf32>
    %27 = arith.negf %26 : vector<2x32xf32>
    %28 = math.exp %27 : vector<2x32xf32>
    %cst_12 = arith.constant 1.000000e+00 : f32
    %29 = vector.broadcast %cst_12 : f32 to vector<2x32xf32>
    %30 = arith.addf %29, %28 : vector<2x32xf32>
    %31 = arith.divf %29, %30 : vector<2x32xf32>
    %32 = arith.mulf %23, %8 : vector<2x32xf32>
    %33 = arith.mulf %17, %25 : vector<2x32xf32>
    %34 = arith.addf %32, %33 : vector<2x32xf32>
    %35 = math.tanh %34 : vector<2x32xf32>
    %36 = arith.mulf %31, %35 : vector<2x32xf32>
    %c0_13 = arith.constant 0 : index
    %c0_14 = arith.constant 0 : index
    %37 = vector.load %arg10[%c0_13, %c0_14] : memref<16x32xf32, #tpu.memory_space<vmem>>, vector<2x32xf32>
    tpu.vector_store %arg10[%c0_13, %c0_14], %36 {strides = array<i32>} : memref<16x32xf32, #tpu.memory_space<vmem>>, vector<2x32xf32>,
    %38 = vector.extract_strided_slice %6 {offsets = [2, 0], sizes = [2, 128], strides = [1, 1]} : vector<16x128xf32> to vector<2x128xf32>
    %cst_15 = arith.constant dense<0.000000e+00> : vector<2x128xf32>
    %39 = tpu.matmul %36, %1, %cst_15 {dimension_numbers = #tpu.dot_dimension_numbers<[1], [0], [0], [1], [0, 0, 1, 1], [], []>} : vector<2x32xf32>, vector<32x128xf32>, vector<2x128xf32> -> vector<2x128xf32>
    %40 = arith.addf %38, %39 : vector<2x128xf32>
    %41 = vector.extract_strided_slice %40 {offsets = [0, 0], sizes = [2, 32], strides = [1, 1]} : vector<2x128xf32> to vector<2x32xf32>
    %42 = arith.negf %41 : vector<2x32xf32>
    %43 = math.exp %42 : vector<2x32xf32>
    %cst_16 = arith.constant 1.000000e+00 : f32
    %44 = vector.broadcast %cst_16 : f32 to vector<2x32xf32>
    %45 = arith.addf %44, %43 : vector<2x32xf32>
    %46 = arith.divf %44, %45 : vector<2x32xf32>
    %47 = vector.extract_strided_slice %40 {offsets = [0, 32], sizes = [2, 32], strides = [1, 1]} : vector<2x128xf32> to vector<2x32xf32>
    %48 = arith.negf %47 : vector<2x32xf32>
    %49 = math.exp %48 : vector<2x32xf32>
    %cst_17 = arith.constant 1.000000e+00 : f32
    %50 = vector.broadcast %cst_17 : f32 to vector<2x32xf32>
    %51 = arith.addf %50, %49 : vector<2x32xf32>
    %52 = arith.divf %50, %51 : vector<2x32xf32>
    %53 = vector.extract_strided_slice %40 {offsets = [0, 64], sizes = [2, 32], strides = [1, 1]} : vector<2x128xf32> to vector<2x32xf32>
    %54 = math.tanh %53 : vector<2x32xf32>
    %55 = vector.extract_strided_slice %40 {offsets = [0, 96], sizes = [2, 32], strides = [1, 1]} : vector<2x128xf32> to vector<2x32xf32>
    %56 = arith.negf %55 : vector<2x32xf32>
    %57 = math.exp %56 : vector<2x32xf32>
    %cst_18 = arith.constant 1.000000e+00 : f32
    %58 = vector.broadcast %cst_18 : f32 to vector<2x32xf32>
    %59 = arith.addf %58, %57 : vector<2x32xf32>
    %60 = arith.divf %58, %59 : vector<2x32xf32>
    %61 = arith.mulf %52, %34 : vector<2x32xf32>
    %62 = arith.mulf %46, %54 : vector<2x32xf32>
    %63 = arith.addf %61, %62 : vector<2x32xf32>
    %64 = math.tanh %63 : vector<2x32xf32>
    %65 = arith.mulf %60, %64 : vector<2x32xf32>
    %c2 = arith.constant 2 : index
    %c0_19 = arith.constant 0 : index
    %66 = vector.load %arg10[%c2, %c0_19] : memref<16x32xf32, #tpu.memory_space<vmem>>, vector<2x32xf32>
    tpu.vector_store %arg10[%c2, %c0_19], %65 {strides = array<i32>} : memref<16x32xf32, #tpu.memory_space<vmem>>, vector<2x32xf32>,
    %67 = vector.extract_strided_slice %6 {offsets = [4, 0], sizes = [2, 128], strides = [1, 1]} : vector<16x128xf32> to vector<2x128xf32>
    %cst_20 = arith.constant dense<0.000000e+00> : vector<2x128xf32>
    %68 = tpu.matmul %65, %1, %cst_20 {dimension_numbers = #tpu.dot_dimension_numbers<[1], [0], [0], [1], [0, 0, 1, 1], [], []>} : vector<2x32xf32>, vector<32x128xf32>, vector<2x128xf32> -> vector<2x128xf32>
    %69 = arith.addf %67, %68 : vector<2x128xf32>
    %70 = vector.extract_strided_slice %69 {offsets = [0, 0], sizes = [2, 32], strides = [1, 1]} : vector<2x128xf32> to vector<2x32xf32>
    %71 = arith.negf %70 : vector<2x32xf32>
    %72 = math.exp %71 : vector<2x32xf32>
    %cst_21 = arith.constant 1.000000e+00 : f32
    %73 = vector.broadcast %cst_21 : f32 to vector<2x32xf32>
    %74 = arith.addf %73, %72 : vector<2x32xf32>
    %75 = arith.divf %73, %74 : vector<2x32xf32>
    %76 = vector.extract_strided_slice %69 {offsets = [0, 32], sizes = [2, 32], strides = [1, 1]} : vector<2x128xf32> to vector<2x32xf32>
    %77 = arith.negf %76 : vector<2x32xf32>
    %78 = math.exp %77 : vector<2x32xf32>
    %cst_22 = arith.constant 1.000000e+00 : f32
    %79 = vector.broadcast %cst_22 : f32 to vector<2x32xf32>
    %80 = arith.addf %79, %78 : vector<2x32xf32>
    %81 = arith.divf %79, %80 : vector<2x32xf32>
    %82 = vector.extract_strided_slice %69 {offsets = [0, 64], sizes = [2, 32], strides = [1, 1]} : vector<2x128xf32> to vector<2x32xf32>
    %83 = math.tanh %82 : vector<2x32xf32>
    %84 = vector.extract_strided_slice %69 {offsets = [0, 96], sizes = [2, 32], strides = [1, 1]} : vector<2x128xf32> to vector<2x32xf32>
    %85 = arith.negf %84 : vector<2x32xf32>
    %86 = math.exp %85 : vector<2x32xf32>
    %cst_23 = arith.constant 1.000000e+00 : f32
    %87 = vector.broadcast %cst_23 : f32 to vector<2x32xf32>
    %88 = arith.addf %87, %86 : vector<2x32xf32>
    %89 = arith.divf %87, %88 : vector<2x32xf32>
    %90 = arith.mulf %81, %63 : vector<2x32xf32>
    %91 = arith.mulf %75, %83 : vector<2x32xf32>
    %92 = arith.addf %90, %91 : vector<2x32xf32>
    %93 = math.tanh %92 : vector<2x32xf32>
    %94 = arith.mulf %89, %93 : vector<2x32xf32>
    %c4 = arith.constant 4 : index
    %c0_24 = arith.constant 0 : index
    %95 = vector.load %arg10[%c4, %c0_24] : memref<16x32xf32, #tpu.memory_space<vmem>>, vector<2x32xf32>
    tpu.vector_store %arg10[%c4, %c0_24], %94 {strides = array<i32>} : memref<16x32xf32, #tpu.memory_space<vmem>>, vector<2x32xf32>,
    %96 = vector.extract_strided_slice %6 {offsets = [6, 0], sizes = [2, 128], strides = [1, 1]} : vector<16x128xf32> to vector<2x128xf32>
    %cst_25 = arith.constant dense<0.000000e+00> : vector<2x128xf32>
    %97 = tpu.matmul %94, %1, %cst_25 {dimension_numbers = #tpu.dot_dimension_numbers<[1], [0], [0], [1], [0, 0, 1, 1], [], []>} : vector<2x32xf32>, vector<32x128xf32>, vector<2x128xf32> -> vector<2x128xf32>
    %98 = arith.addf %96, %97 : vector<2x128xf32>
    %99 = vector.extract_strided_slice %98 {offsets = [0, 0], sizes = [2, 32], strides = [1, 1]} : vector<2x128xf32> to vector<2x32xf32>
    %100 = arith.negf %99 : vector<2x32xf32>
    %101 = math.exp %100 : vector<2x32xf32>
    %cst_26 = arith.constant 1.000000e+00 : f32
    %102 = vector.broadcast %cst_26 : f32 to vector<2x32xf32>
    %103 = arith.addf %102, %101 : vector<2x32xf32>
    %104 = arith.divf %102, %103 : vector<2x32xf32>
    %105 = vector.extract_strided_slice %98 {offsets = [0, 32], sizes = [2, 32], strides = [1, 1]} : vector<2x128xf32> to vector<2x32xf32>
    %106 = arith.negf %105 : vector<2x32xf32>
    %107 = math.exp %106 : vector<2x32xf32>
    %cst_27 = arith.constant 1.000000e+00 : f32
    %108 = vector.broadcast %cst_27 : f32 to vector<2x32xf32>
    %109 = arith.addf %108, %107 : vector<2x32xf32>
    %110 = arith.divf %108, %109 : vector<2x32xf32>
    %111 = vector.extract_strided_slice %98 {offsets = [0, 64], sizes = [2, 32], strides = [1, 1]} : vector<2x128xf32> to vector<2x32xf32>
    %112 = math.tanh %111 : vector<2x32xf32>
    %113 = vector.extract_strided_slice %98 {offsets = [0, 96], sizes = [2, 32], strides = [1, 1]} : vector<2x128xf32> to vector<2x32xf32>
    %114 = arith.negf %113 : vector<2x32xf32>
    %115 = math.exp %114 : vector<2x32xf32>
    %cst_28 = arith.constant 1.000000e+00 : f32
    %116 = vector.broadcast %cst_28 : f32 to vector<2x32xf32>
    %117 = arith.addf %116, %115 : vector<2x32xf32>
    %118 = arith.divf %116, %117 : vector<2x32xf32>
    %119 = arith.mulf %110, %92 : vector<2x32xf32>
    %120 = arith.mulf %104, %112 : vector<2x32xf32>
    %121 = arith.addf %119, %120 : vector<2x32xf32>
    %122 = math.tanh %121 : vector<2x32xf32>
    %123 = arith.mulf %118, %122 : vector<2x32xf32>
    %c6 = arith.constant 6 : index
    %c0_29 = arith.constant 0 : index
    %124 = vector.load %arg10[%c6, %c0_29] : memref<16x32xf32, #tpu.memory_space<vmem>>, vector<2x32xf32>
    tpu.vector_store %arg10[%c6, %c0_29], %123 {strides = array<i32>} : memref<16x32xf32, #tpu.memory_space<vmem>>, vector<2x32xf32>,
    %125 = vector.extract_strided_slice %6 {offsets = [8, 0], sizes = [2, 128], strides = [1, 1]} : vector<16x128xf32> to vector<2x128xf32>
    %cst_30 = arith.constant dense<0.000000e+00> : vector<2x128xf32>
    %126 = tpu.matmul %123, %1, %cst_30 {dimension_numbers = #tpu.dot_dimension_numbers<[1], [0], [0], [1], [0, 0, 1, 1], [], []>} : vector<2x32xf32>, vector<32x128xf32>, vector<2x128xf32> -> vector<2x128xf32>
    %127 = arith.addf %125, %126 : vector<2x128xf32>
    %128 = vector.extract_strided_slice %127 {offsets = [0, 0], sizes = [2, 32], strides = [1, 1]} : vector<2x128xf32> to vector<2x32xf32>
    %129 = arith.negf %128 : vector<2x32xf32>
    %130 = math.exp %129 : vector<2x32xf32>
    %cst_31 = arith.constant 1.000000e+00 : f32
    %131 = vector.broadcast %cst_31 : f32 to vector<2x32xf32>
    %132 = arith.addf %131, %130 : vector<2x32xf32>
    %133 = arith.divf %131, %132 : vector<2x32xf32>
    %134 = vector.extract_strided_slice %127 {offsets = [0, 32], sizes = [2, 32], strides = [1, 1]} : vector<2x128xf32> to vector<2x32xf32>
    %135 = arith.negf %134 : vector<2x32xf32>
    %136 = math.exp %135 : vector<2x32xf32>
    %cst_32 = arith.constant 1.000000e+00 : f32
    %137 = vector.broadcast %cst_32 : f32 to vector<2x32xf32>
    %138 = arith.addf %137, %136 : vector<2x32xf32>
    %139 = arith.divf %137, %138 : vector<2x32xf32>
    %140 = vector.extract_strided_slice %127 {offsets = [0, 64], sizes = [2, 32], strides = [1, 1]} : vector<2x128xf32> to vector<2x32xf32>
    %141 = math.tanh %140 : vector<2x32xf32>
    %142 = vector.extract_strided_slice %127 {offsets = [0, 96], sizes = [2, 32], strides = [1, 1]} : vector<2x128xf32> to vector<2x32xf32>
    %143 = arith.negf %142 : vector<2x32xf32>
    %144 = math.exp %143 : vector<2x32xf32>
    %cst_33 = arith.constant 1.000000e+00 : f32
    %145 = vector.broadcast %cst_33 : f32 to vector<2x32xf32>
    %146 = arith.addf %145, %144 : vector<2x32xf32>
    %147 = arith.divf %145, %146 : vector<2x32xf32>
    %148 = arith.mulf %139, %121 : vector<2x32xf32>
    %149 = arith.mulf %133, %141 : vector<2x32xf32>
    %150 = arith.addf %148, %149 : vector<2x32xf32>
    %151 = math.tanh %150 : vector<2x32xf32>
    %152 = arith.mulf %147, %151 : vector<2x32xf32>
    %c8 = arith.constant 8 : index
    %c0_34 = arith.constant 0 : index
    %153 = vector.load %arg10[%c8, %c0_34] : memref<16x32xf32, #tpu.memory_space<vmem>>, vector<2x32xf32>
    tpu.vector_store %arg10[%c8, %c0_34], %152 {strides = array<i32>} : memref<16x32xf32, #tpu.memory_space<vmem>>, vector<2x32xf32>,
    %154 = vector.extract_strided_slice %6 {offsets = [10, 0], sizes = [2, 128], strides = [1, 1]} : vector<16x128xf32> to vector<2x128xf32>
    %cst_35 = arith.constant dense<0.000000e+00> : vector<2x128xf32>
    %155 = tpu.matmul %152, %1, %cst_35 {dimension_numbers = #tpu.dot_dimension_numbers<[1], [0], [0], [1], [0, 0, 1, 1], [], []>} : vector<2x32xf32>, vector<32x128xf32>, vector<2x128xf32> -> vector<2x128xf32>
    %156 = arith.addf %154, %155 : vector<2x128xf32>
    %157 = vector.extract_strided_slice %156 {offsets = [0, 0], sizes = [2, 32], strides = [1, 1]} : vector<2x128xf32> to vector<2x32xf32>
    %158 = arith.negf %157 : vector<2x32xf32>
    %159 = math.exp %158 : vector<2x32xf32>
    %cst_36 = arith.constant 1.000000e+00 : f32
    %160 = vector.broadcast %cst_36 : f32 to vector<2x32xf32>
    %161 = arith.addf %160, %159 : vector<2x32xf32>
    %162 = arith.divf %160, %161 : vector<2x32xf32>
    %163 = vector.extract_strided_slice %156 {offsets = [0, 32], sizes = [2, 32], strides = [1, 1]} : vector<2x128xf32> to vector<2x32xf32>
    %164 = arith.negf %163 : vector<2x32xf32>
    %165 = math.exp %164 : vector<2x32xf32>
    %cst_37 = arith.constant 1.000000e+00 : f32
    %166 = vector.broadcast %cst_37 : f32 to vector<2x32xf32>
    %167 = arith.addf %166, %165 : vector<2x32xf32>
    %168 = arith.divf %166, %167 : vector<2x32xf32>
    %169 = vector.extract_strided_slice %156 {offsets = [0, 64], sizes = [2, 32], strides = [1, 1]} : vector<2x128xf32> to vector<2x32xf32>
    %170 = math.tanh %169 : vector<2x32xf32>
    %171 = vector.extract_strided_slice %156 {offsets = [0, 96], sizes = [2, 32], strides = [1, 1]} : vector<2x128xf32> to vector<2x32xf32>
    %172 = arith.negf %171 : vector<2x32xf32>
    %173 = math.exp %172 : vector<2x32xf32>
    %cst_38 = arith.constant 1.000000e+00 : f32
    %174 = vector.broadcast %cst_38 : f32 to vector<2x32xf32>
    %175 = arith.addf %174, %173 : vector<2x32xf32>
    %176 = arith.divf %174, %175 : vector<2x32xf32>
    %177 = arith.mulf %168, %150 : vector<2x32xf32>
    %178 = arith.mulf %162, %170 : vector<2x32xf32>
    %179 = arith.addf %177, %178 : vector<2x32xf32>
    %180 = math.tanh %179 : vector<2x32xf32>
    %181 = arith.mulf %176, %180 : vector<2x32xf32>
    %c10 = arith.constant 10 : index
    %c0_39 = arith.constant 0 : index
    %182 = vector.load %arg10[%c10, %c0_39] : memref<16x32xf32, #tpu.memory_space<vmem>>, vector<2x32xf32>
    tpu.vector_store %arg10[%c10, %c0_39], %181 {strides = array<i32>} : memref<16x32xf32, #tpu.memory_space<vmem>>, vector<2x32xf32>,
    %183 = vector.extract_strided_slice %6 {offsets = [12, 0], sizes = [2, 128], strides = [1, 1]} : vector<16x128xf32> to vector<2x128xf32>
    %cst_40 = arith.constant dense<0.000000e+00> : vector<2x128xf32>
    %184 = tpu.matmul %181, %1, %cst_40 {dimension_numbers = #tpu.dot_dimension_numbers<[1], [0], [0], [1], [0, 0, 1, 1], [], []>} : vector<2x32xf32>, vector<32x128xf32>, vector<2x128xf32> -> vector<2x128xf32>
    %185 = arith.addf %183, %184 : vector<2x128xf32>
    %186 = vector.extract_strided_slice %185 {offsets = [0, 0], sizes = [2, 32], strides = [1, 1]} : vector<2x128xf32> to vector<2x32xf32>
    %187 = arith.negf %186 : vector<2x32xf32>
    %188 = math.exp %187 : vector<2x32xf32>
    %cst_41 = arith.constant 1.000000e+00 : f32
    %189 = vector.broadcast %cst_41 : f32 to vector<2x32xf32>
    %190 = arith.addf %189, %188 : vector<2x32xf32>
    %191 = arith.divf %189, %190 : vector<2x32xf32>
    %192 = vector.extract_strided_slice %185 {offsets = [0, 32], sizes = [2, 32], strides = [1, 1]} : vector<2x128xf32> to vector<2x32xf32>
    %193 = arith.negf %192 : vector<2x32xf32>
    %194 = math.exp %193 : vector<2x32xf32>
    %cst_42 = arith.constant 1.000000e+00 : f32
    %195 = vector.broadcast %cst_42 : f32 to vector<2x32xf32>
    %196 = arith.addf %195, %194 : vector<2x32xf32>
    %197 = arith.divf %195, %196 : vector<2x32xf32>
    %198 = vector.extract_strided_slice %185 {offsets = [0, 64], sizes = [2, 32], strides = [1, 1]} : vector<2x128xf32> to vector<2x32xf32>
    %199 = math.tanh %198 : vector<2x32xf32>
    %200 = vector.extract_strided_slice %185 {offsets = [0, 96], sizes = [2, 32], strides = [1, 1]} : vector<2x128xf32> to vector<2x32xf32>
    %201 = arith.negf %200 : vector<2x32xf32>
    %202 = math.exp %201 : vector<2x32xf32>
    %cst_43 = arith.constant 1.000000e+00 : f32
    %203 = vector.broadcast %cst_43 : f32 to vector<2x32xf32>
    %204 = arith.addf %203, %202 : vector<2x32xf32>
    %205 = arith.divf %203, %204 : vector<2x32xf32>
    %206 = arith.mulf %197, %179 : vector<2x32xf32>
    %207 = arith.mulf %191, %199 : vector<2x32xf32>
    %208 = arith.addf %206, %207 : vector<2x32xf32>
    %209 = math.tanh %208 : vector<2x32xf32>
    %210 = arith.mulf %205, %209 : vector<2x32xf32>
    %c12 = arith.constant 12 : index
    %c0_44 = arith.constant 0 : index
    %211 = vector.load %arg10[%c12, %c0_44] : memref<16x32xf32, #tpu.memory_space<vmem>>, vector<2x32xf32>
    tpu.vector_store %arg10[%c12, %c0_44], %210 {strides = array<i32>} : memref<16x32xf32, #tpu.memory_space<vmem>>, vector<2x32xf32>,
    %212 = vector.extract_strided_slice %6 {offsets = [14, 0], sizes = [2, 128], strides = [1, 1]} : vector<16x128xf32> to vector<2x128xf32>
    %cst_45 = arith.constant dense<0.000000e+00> : vector<2x128xf32>
    %213 = tpu.matmul %210, %1, %cst_45 {dimension_numbers = #tpu.dot_dimension_numbers<[1], [0], [0], [1], [0, 0, 1, 1], [], []>} : vector<2x32xf32>, vector<32x128xf32>, vector<2x128xf32> -> vector<2x128xf32>
    %214 = arith.addf %212, %213 : vector<2x128xf32>
    %215 = vector.extract_strided_slice %214 {offsets = [0, 0], sizes = [2, 32], strides = [1, 1]} : vector<2x128xf32> to vector<2x32xf32>
    %216 = arith.negf %215 : vector<2x32xf32>
    %217 = math.exp %216 : vector<2x32xf32>
    %cst_46 = arith.constant 1.000000e+00 : f32
    %218 = vector.broadcast %cst_46 : f32 to vector<2x32xf32>
    %219 = arith.addf %218, %217 : vector<2x32xf32>
    %220 = arith.divf %218, %219 : vector<2x32xf32>
    %221 = vector.extract_strided_slice %214 {offsets = [0, 32], sizes = [2, 32], strides = [1, 1]} : vector<2x128xf32> to vector<2x32xf32>
    %222 = arith.negf %221 : vector<2x32xf32>
    %223 = math.exp %222 : vector<2x32xf32>
    %cst_47 = arith.constant 1.000000e+00 : f32
    %224 = vector.broadcast %cst_47 : f32 to vector<2x32xf32>
    %225 = arith.addf %224, %223 : vector<2x32xf32>
    %226 = arith.divf %224, %225 : vector<2x32xf32>
    %227 = vector.extract_strided_slice %214 {offsets = [0, 64], sizes = [2, 32], strides = [1, 1]} : vector<2x128xf32> to vector<2x32xf32>
    %228 = math.tanh %227 : vector<2x32xf32>
    %229 = vector.extract_strided_slice %214 {offsets = [0, 96], sizes = [2, 32], strides = [1, 1]} : vector<2x128xf32> to vector<2x32xf32>
    %230 = arith.negf %229 : vector<2x32xf32>
    %231 = math.exp %230 : vector<2x32xf32>
    %cst_48 = arith.constant 1.000000e+00 : f32
    %232 = vector.broadcast %cst_48 : f32 to vector<2x32xf32>
    %233 = arith.addf %232, %231 : vector<2x32xf32>
    %234 = arith.divf %232, %233 : vector<2x32xf32>
    %235 = arith.mulf %226, %208 : vector<2x32xf32>
    %236 = arith.mulf %220, %228 : vector<2x32xf32>
    %237 = arith.addf %235, %236 : vector<2x32xf32>
    %238 = math.tanh %237 : vector<2x32xf32>
    %239 = arith.mulf %234, %238 : vector<2x32xf32>
    %c14 = arith.constant 14 : index
    %c0_49 = arith.constant 0 : index
    %240 = vector.load %arg10[%c14, %c0_49] : memref<16x32xf32, #tpu.memory_space<vmem>>, vector<2x32xf32>
    tpu.vector_store %arg10[%c14, %c0_49], %239 {strides = array<i32>} : memref<16x32xf32, #tpu.memory_space<vmem>>, vector<2x32xf32>,
    %c0_50 = arith.constant 0 : index
    %c0_51 = arith.constant 0 : index
    %241 = vector.load %arg4[%c0_50, %c0_51] : memref<32x128xf32, #tpu.memory_space<vmem>>, vector<32x128xf32>
    %c0_52 = arith.constant 0 : index
    %c0_53 = arith.constant 0 : index
    %242 = vector.load %arg5[%c0_52, %c0_53] : memref<32x128xf32, #tpu.memory_space<vmem>>, vector<32x128xf32>
    %c0_54 = arith.constant 0 : index
    %c0_55 = arith.constant 0 : index
    %243 = vector.load %arg6[%c0_54, %c0_55] : memref<1x128xf32, #tpu.memory_space<vmem>>, vector<1x128xf32>
    %c0_56 = arith.constant 0 : index
    %c0_57 = arith.constant 0 : index
    %244 = vector.load %arg10[%c0_56, %c0_57] : memref<16x32xf32, #tpu.memory_space<vmem>>, vector<16x32xf32>
    %cst_58 = arith.constant dense<0.000000e+00> : vector<16x128xf32>
    %245 = tpu.matmul %244, %241, %cst_58 {dimension_numbers = #tpu.dot_dimension_numbers<[1], [0], [0], [1], [0, 0, 1, 1], [], []>} : vector<16x32xf32>, vector<32x128xf32>, vector<16x128xf32> -> vector<16x128xf32>
    %246 = vector.broadcast %243 : vector<1x128xf32> to vector<16x128xf32>
    %247 = arith.addf %245, %246 : vector<16x128xf32>
    %cst_59 = arith.constant 0.000000e+00 : f32
    %248 = vector.broadcast %cst_59 : f32 to vector<2x32xf32>
    %cst_60 = arith.constant 0.000000e+00 : f32
    %249 = vector.broadcast %cst_60 : f32 to vector<2x32xf32>
    %250 = vector.extract_strided_slice %247 {offsets = [0, 0], sizes = [2, 128], strides = [1, 1]} : vector<16x128xf32> to vector<2x128xf32>
    %cst_61 = arith.constant dense<0.000000e+00> : vector<2x128xf32>
    %251 = tpu.matmul %248, %242, %cst_61 {dimension_numbers = #tpu.dot_dimension_numbers<[1], [0], [0], [1], [0, 0, 1, 1], [], []>} : vector<2x32xf32>, vector<32x128xf32>, vector<2x128xf32> -> vector<2x128xf32>
    %252 = arith.addf %250, %251 : vector<2x128xf32>
    %253 = vector.extract_strided_slice %252 {offsets = [0, 0], sizes = [2, 32], strides = [1, 1]} : vector<2x128xf32> to vector<2x32xf32>
    %254 = arith.negf %253 : vector<2x32xf32>
    %255 = math.exp %254 : vector<2x32xf32>
    %cst_62 = arith.constant 1.000000e+00 : f32
    %256 = vector.broadcast %cst_62 : f32 to vector<2x32xf32>
    %257 = arith.addf %256, %255 : vector<2x32xf32>
    %258 = arith.divf %256, %257 : vector<2x32xf32>
    %259 = vector.extract_strided_slice %252 {offsets = [0, 32], sizes = [2, 32], strides = [1, 1]} : vector<2x128xf32> to vector<2x32xf32>
    %260 = arith.negf %259 : vector<2x32xf32>
    %261 = math.exp %260 : vector<2x32xf32>
    %cst_63 = arith.constant 1.000000e+00 : f32
    %262 = vector.broadcast %cst_63 : f32 to vector<2x32xf32>
    %263 = arith.addf %262, %261 : vector<2x32xf32>
    %264 = arith.divf %262, %263 : vector<2x32xf32>
    %265 = vector.extract_strided_slice %252 {offsets = [0, 64], sizes = [2, 32], strides = [1, 1]} : vector<2x128xf32> to vector<2x32xf32>
    %266 = math.tanh %265 : vector<2x32xf32>
    %267 = vector.extract_strided_slice %252 {offsets = [0, 96], sizes = [2, 32], strides = [1, 1]} : vector<2x128xf32> to vector<2x32xf32>
    %268 = arith.negf %267 : vector<2x32xf32>
    %269 = math.exp %268 : vector<2x32xf32>
    %cst_64 = arith.constant 1.000000e+00 : f32
    %270 = vector.broadcast %cst_64 : f32 to vector<2x32xf32>
    %271 = arith.addf %270, %269 : vector<2x32xf32>
    %272 = arith.divf %270, %271 : vector<2x32xf32>
    %273 = arith.mulf %264, %249 : vector<2x32xf32>
    %274 = arith.mulf %258, %266 : vector<2x32xf32>
    %275 = arith.addf %273, %274 : vector<2x32xf32>
    %276 = math.tanh %275 : vector<2x32xf32>
    %277 = arith.mulf %272, %276 : vector<2x32xf32>
    %278 = vector.extract_strided_slice %247 {offsets = [2, 0], sizes = [2, 128], strides = [1, 1]} : vector<16x128xf32> to vector<2x128xf32>
    %cst_65 = arith.constant dense<0.000000e+00> : vector<2x128xf32>
    %279 = tpu.matmul %277, %242, %cst_65 {dimension_numbers = #tpu.dot_dimension_numbers<[1], [0], [0], [1], [0, 0, 1, 1], [], []>} : vector<2x32xf32>, vector<32x128xf32>, vector<2x128xf32> -> vector<2x128xf32>
    %280 = arith.addf %278, %279 : vector<2x128xf32>
    %281 = vector.extract_strided_slice %280 {offsets = [0, 0], sizes = [2, 32], strides = [1, 1]} : vector<2x128xf32> to vector<2x32xf32>
    %282 = arith.negf %281 : vector<2x32xf32>
    %283 = math.exp %282 : vector<2x32xf32>
    %cst_66 = arith.constant 1.000000e+00 : f32
    %284 = vector.broadcast %cst_66 : f32 to vector<2x32xf32>
    %285 = arith.addf %284, %283 : vector<2x32xf32>
    %286 = arith.divf %284, %285 : vector<2x32xf32>
    %287 = vector.extract_strided_slice %280 {offsets = [0, 32], sizes = [2, 32], strides = [1, 1]} : vector<2x128xf32> to vector<2x32xf32>
    %288 = arith.negf %287 : vector<2x32xf32>
    %289 = math.exp %288 : vector<2x32xf32>
    %cst_67 = arith.constant 1.000000e+00 : f32
    %290 = vector.broadcast %cst_67 : f32 to vector<2x32xf32>
    %291 = arith.addf %290, %289 : vector<2x32xf32>
    %292 = arith.divf %290, %291 : vector<2x32xf32>
    %293 = vector.extract_strided_slice %280 {offsets = [0, 64], sizes = [2, 32], strides = [1, 1]} : vector<2x128xf32> to vector<2x32xf32>
    %294 = math.tanh %293 : vector<2x32xf32>
    %295 = vector.extract_strided_slice %280 {offsets = [0, 96], sizes = [2, 32], strides = [1, 1]} : vector<2x128xf32> to vector<2x32xf32>
    %296 = arith.negf %295 : vector<2x32xf32>
    %297 = math.exp %296 : vector<2x32xf32>
    %cst_68 = arith.constant 1.000000e+00 : f32
    %298 = vector.broadcast %cst_68 : f32 to vector<2x32xf32>
    %299 = arith.addf %298, %297 : vector<2x32xf32>
    %300 = arith.divf %298, %299 : vector<2x32xf32>
    %301 = arith.mulf %292, %275 : vector<2x32xf32>
    %302 = arith.mulf %286, %294 : vector<2x32xf32>
    %303 = arith.addf %301, %302 : vector<2x32xf32>
    %304 = math.tanh %303 : vector<2x32xf32>
    %305 = arith.mulf %300, %304 : vector<2x32xf32>
    %306 = vector.extract_strided_slice %247 {offsets = [4, 0], sizes = [2, 128], strides = [1, 1]} : vector<16x128xf32> to vector<2x128xf32>
    %cst_69 = arith.constant dense<0.000000e+00> : vector<2x128xf32>
    %307 = tpu.matmul %305, %242, %cst_69 {dimension_numbers = #tpu.dot_dimension_numbers<[1], [0], [0], [1], [0, 0, 1, 1], [], []>} : vector<2x32xf32>, vector<32x128xf32>, vector<2x128xf32> -> vector<2x128xf32>
    %308 = arith.addf %306, %307 : vector<2x128xf32>
    %309 = vector.extract_strided_slice %308 {offsets = [0, 0], sizes = [2, 32], strides = [1, 1]} : vector<2x128xf32> to vector<2x32xf32>
    %310 = arith.negf %309 : vector<2x32xf32>
    %311 = math.exp %310 : vector<2x32xf32>
    %cst_70 = arith.constant 1.000000e+00 : f32
    %312 = vector.broadcast %cst_70 : f32 to vector<2x32xf32>
    %313 = arith.addf %312, %311 : vector<2x32xf32>
    %314 = arith.divf %312, %313 : vector<2x32xf32>
    %315 = vector.extract_strided_slice %308 {offsets = [0, 32], sizes = [2, 32], strides = [1, 1]} : vector<2x128xf32> to vector<2x32xf32>
    %316 = arith.negf %315 : vector<2x32xf32>
    %317 = math.exp %316 : vector<2x32xf32>
    %cst_71 = arith.constant 1.000000e+00 : f32
    %318 = vector.broadcast %cst_71 : f32 to vector<2x32xf32>
    %319 = arith.addf %318, %317 : vector<2x32xf32>
    %320 = arith.divf %318, %319 : vector<2x32xf32>
    %321 = vector.extract_strided_slice %308 {offsets = [0, 64], sizes = [2, 32], strides = [1, 1]} : vector<2x128xf32> to vector<2x32xf32>
    %322 = math.tanh %321 : vector<2x32xf32>
    %323 = vector.extract_strided_slice %308 {offsets = [0, 96], sizes = [2, 32], strides = [1, 1]} : vector<2x128xf32> to vector<2x32xf32>
    %324 = arith.negf %323 : vector<2x32xf32>
    %325 = math.exp %324 : vector<2x32xf32>
    %cst_72 = arith.constant 1.000000e+00 : f32
    %326 = vector.broadcast %cst_72 : f32 to vector<2x32xf32>
    %327 = arith.addf %326, %325 : vector<2x32xf32>
    %328 = arith.divf %326, %327 : vector<2x32xf32>
    %329 = arith.mulf %320, %303 : vector<2x32xf32>
    %330 = arith.mulf %314, %322 : vector<2x32xf32>
    %331 = arith.addf %329, %330 : vector<2x32xf32>
    %332 = math.tanh %331 : vector<2x32xf32>
    %333 = arith.mulf %328, %332 : vector<2x32xf32>
    %334 = vector.extract_strided_slice %247 {offsets = [6, 0], sizes = [2, 128], strides = [1, 1]} : vector<16x128xf32> to vector<2x128xf32>
    %cst_73 = arith.constant dense<0.000000e+00> : vector<2x128xf32>
    %335 = tpu.matmul %333, %242, %cst_73 {dimension_numbers = #tpu.dot_dimension_numbers<[1], [0], [0], [1], [0, 0, 1, 1], [], []>} : vector<2x32xf32>, vector<32x128xf32>, vector<2x128xf32> -> vector<2x128xf32>
    %336 = arith.addf %334, %335 : vector<2x128xf32>
    %337 = vector.extract_strided_slice %336 {offsets = [0, 0], sizes = [2, 32], strides = [1, 1]} : vector<2x128xf32> to vector<2x32xf32>
    %338 = arith.negf %337 : vector<2x32xf32>
    %339 = math.exp %338 : vector<2x32xf32>
    %cst_74 = arith.constant 1.000000e+00 : f32
    %340 = vector.broadcast %cst_74 : f32 to vector<2x32xf32>
    %341 = arith.addf %340, %339 : vector<2x32xf32>
    %342 = arith.divf %340, %341 : vector<2x32xf32>
    %343 = vector.extract_strided_slice %336 {offsets = [0, 32], sizes = [2, 32], strides = [1, 1]} : vector<2x128xf32> to vector<2x32xf32>
    %344 = arith.negf %343 : vector<2x32xf32>
    %345 = math.exp %344 : vector<2x32xf32>
    %cst_75 = arith.constant 1.000000e+00 : f32
    %346 = vector.broadcast %cst_75 : f32 to vector<2x32xf32>
    %347 = arith.addf %346, %345 : vector<2x32xf32>
    %348 = arith.divf %346, %347 : vector<2x32xf32>
    %349 = vector.extract_strided_slice %336 {offsets = [0, 64], sizes = [2, 32], strides = [1, 1]} : vector<2x128xf32> to vector<2x32xf32>
    %350 = math.tanh %349 : vector<2x32xf32>
    %351 = vector.extract_strided_slice %336 {offsets = [0, 96], sizes = [2, 32], strides = [1, 1]} : vector<2x128xf32> to vector<2x32xf32>
    %352 = arith.negf %351 : vector<2x32xf32>
    %353 = math.exp %352 : vector<2x32xf32>
    %cst_76 = arith.constant 1.000000e+00 : f32
    %354 = vector.broadcast %cst_76 : f32 to vector<2x32xf32>
    %355 = arith.addf %354, %353 : vector<2x32xf32>
    %356 = arith.divf %354, %355 : vector<2x32xf32>
    %357 = arith.mulf %348, %331 : vector<2x32xf32>
    %358 = arith.mulf %342, %350 : vector<2x32xf32>
    %359 = arith.addf %357, %358 : vector<2x32xf32>
    %360 = math.tanh %359 : vector<2x32xf32>
    %361 = arith.mulf %356, %360 : vector<2x32xf32>
    %362 = vector.extract_strided_slice %247 {offsets = [8, 0], sizes = [2, 128], strides = [1, 1]} : vector<16x128xf32> to vector<2x128xf32>
    %cst_77 = arith.constant dense<0.000000e+00> : vector<2x128xf32>
    %363 = tpu.matmul %361, %242, %cst_77 {dimension_numbers = #tpu.dot_dimension_numbers<[1], [0], [0], [1], [0, 0, 1, 1], [], []>} : vector<2x32xf32>, vector<32x128xf32>, vector<2x128xf32> -> vector<2x128xf32>
    %364 = arith.addf %362, %363 : vector<2x128xf32>
    %365 = vector.extract_strided_slice %364 {offsets = [0, 0], sizes = [2, 32], strides = [1, 1]} : vector<2x128xf32> to vector<2x32xf32>
    %366 = arith.negf %365 : vector<2x32xf32>
    %367 = math.exp %366 : vector<2x32xf32>
    %cst_78 = arith.constant 1.000000e+00 : f32
    %368 = vector.broadcast %cst_78 : f32 to vector<2x32xf32>
    %369 = arith.addf %368, %367 : vector<2x32xf32>
    %370 = arith.divf %368, %369 : vector<2x32xf32>
    %371 = vector.extract_strided_slice %364 {offsets = [0, 32], sizes = [2, 32], strides = [1, 1]} : vector<2x128xf32> to vector<2x32xf32>
    %372 = arith.negf %371 : vector<2x32xf32>
    %373 = math.exp %372 : vector<2x32xf32>
    %cst_79 = arith.constant 1.000000e+00 : f32
    %374 = vector.broadcast %cst_79 : f32 to vector<2x32xf32>
    %375 = arith.addf %374, %373 : vector<2x32xf32>
    %376 = arith.divf %374, %375 : vector<2x32xf32>
    %377 = vector.extract_strided_slice %364 {offsets = [0, 64], sizes = [2, 32], strides = [1, 1]} : vector<2x128xf32> to vector<2x32xf32>
    %378 = math.tanh %377 : vector<2x32xf32>
    %379 = vector.extract_strided_slice %364 {offsets = [0, 96], sizes = [2, 32], strides = [1, 1]} : vector<2x128xf32> to vector<2x32xf32>
    %380 = arith.negf %379 : vector<2x32xf32>
    %381 = math.exp %380 : vector<2x32xf32>
    %cst_80 = arith.constant 1.000000e+00 : f32
    %382 = vector.broadcast %cst_80 : f32 to vector<2x32xf32>
    %383 = arith.addf %382, %381 : vector<2x32xf32>
    %384 = arith.divf %382, %383 : vector<2x32xf32>
    %385 = arith.mulf %376, %359 : vector<2x32xf32>
    %386 = arith.mulf %370, %378 : vector<2x32xf32>
    %387 = arith.addf %385, %386 : vector<2x32xf32>
    %388 = math.tanh %387 : vector<2x32xf32>
    %389 = arith.mulf %384, %388 : vector<2x32xf32>
    %390 = vector.extract_strided_slice %247 {offsets = [10, 0], sizes = [2, 128], strides = [1, 1]} : vector<16x128xf32> to vector<2x128xf32>
    %cst_81 = arith.constant dense<0.000000e+00> : vector<2x128xf32>
    %391 = tpu.matmul %389, %242, %cst_81 {dimension_numbers = #tpu.dot_dimension_numbers<[1], [0], [0], [1], [0, 0, 1, 1], [], []>} : vector<2x32xf32>, vector<32x128xf32>, vector<2x128xf32> -> vector<2x128xf32>
    %392 = arith.addf %390, %391 : vector<2x128xf32>
    %393 = vector.extract_strided_slice %392 {offsets = [0, 0], sizes = [2, 32], strides = [1, 1]} : vector<2x128xf32> to vector<2x32xf32>
    %394 = arith.negf %393 : vector<2x32xf32>
    %395 = math.exp %394 : vector<2x32xf32>
    %cst_82 = arith.constant 1.000000e+00 : f32
    %396 = vector.broadcast %cst_82 : f32 to vector<2x32xf32>
    %397 = arith.addf %396, %395 : vector<2x32xf32>
    %398 = arith.divf %396, %397 : vector<2x32xf32>
    %399 = vector.extract_strided_slice %392 {offsets = [0, 32], sizes = [2, 32], strides = [1, 1]} : vector<2x128xf32> to vector<2x32xf32>
    %400 = arith.negf %399 : vector<2x32xf32>
    %401 = math.exp %400 : vector<2x32xf32>
    %cst_83 = arith.constant 1.000000e+00 : f32
    %402 = vector.broadcast %cst_83 : f32 to vector<2x32xf32>
    %403 = arith.addf %402, %401 : vector<2x32xf32>
    %404 = arith.divf %402, %403 : vector<2x32xf32>
    %405 = vector.extract_strided_slice %392 {offsets = [0, 64], sizes = [2, 32], strides = [1, 1]} : vector<2x128xf32> to vector<2x32xf32>
    %406 = math.tanh %405 : vector<2x32xf32>
    %407 = vector.extract_strided_slice %392 {offsets = [0, 96], sizes = [2, 32], strides = [1, 1]} : vector<2x128xf32> to vector<2x32xf32>
    %408 = arith.negf %407 : vector<2x32xf32>
    %409 = math.exp %408 : vector<2x32xf32>
    %cst_84 = arith.constant 1.000000e+00 : f32
    %410 = vector.broadcast %cst_84 : f32 to vector<2x32xf32>
    %411 = arith.addf %410, %409 : vector<2x32xf32>
    %412 = arith.divf %410, %411 : vector<2x32xf32>
    %413 = arith.mulf %404, %387 : vector<2x32xf32>
    %414 = arith.mulf %398, %406 : vector<2x32xf32>
    %415 = arith.addf %413, %414 : vector<2x32xf32>
    %416 = math.tanh %415 : vector<2x32xf32>
    %417 = arith.mulf %412, %416 : vector<2x32xf32>
    %418 = vector.extract_strided_slice %247 {offsets = [12, 0], sizes = [2, 128], strides = [1, 1]} : vector<16x128xf32> to vector<2x128xf32>
    %cst_85 = arith.constant dense<0.000000e+00> : vector<2x128xf32>
    %419 = tpu.matmul %417, %242, %cst_85 {dimension_numbers = #tpu.dot_dimension_numbers<[1], [0], [0], [1], [0, 0, 1, 1], [], []>} : vector<2x32xf32>, vector<32x128xf32>, vector<2x128xf32> -> vector<2x128xf32>
    %420 = arith.addf %418, %419 : vector<2x128xf32>
    %421 = vector.extract_strided_slice %420 {offsets = [0, 0], sizes = [2, 32], strides = [1, 1]} : vector<2x128xf32> to vector<2x32xf32>
    %422 = arith.negf %421 : vector<2x32xf32>
    %423 = math.exp %422 : vector<2x32xf32>
    %cst_86 = arith.constant 1.000000e+00 : f32
    %424 = vector.broadcast %cst_86 : f32 to vector<2x32xf32>
    %425 = arith.addf %424, %423 : vector<2x32xf32>
    %426 = arith.divf %424, %425 : vector<2x32xf32>
    %427 = vector.extract_strided_slice %420 {offsets = [0, 32], sizes = [2, 32], strides = [1, 1]} : vector<2x128xf32> to vector<2x32xf32>
    %428 = arith.negf %427 : vector<2x32xf32>
    %429 = math.exp %428 : vector<2x32xf32>
    %cst_87 = arith.constant 1.000000e+00 : f32
    %430 = vector.broadcast %cst_87 : f32 to vector<2x32xf32>
    %431 = arith.addf %430, %429 : vector<2x32xf32>
    %432 = arith.divf %430, %431 : vector<2x32xf32>
    %433 = vector.extract_strided_slice %420 {offsets = [0, 64], sizes = [2, 32], strides = [1, 1]} : vector<2x128xf32> to vector<2x32xf32>
    %434 = math.tanh %433 : vector<2x32xf32>
    %435 = vector.extract_strided_slice %420 {offsets = [0, 96], sizes = [2, 32], strides = [1, 1]} : vector<2x128xf32> to vector<2x32xf32>
    %436 = arith.negf %435 : vector<2x32xf32>
    %437 = math.exp %436 : vector<2x32xf32>
    %cst_88 = arith.constant 1.000000e+00 : f32
    %438 = vector.broadcast %cst_88 : f32 to vector<2x32xf32>
    %439 = arith.addf %438, %437 : vector<2x32xf32>
    %440 = arith.divf %438, %439 : vector<2x32xf32>
    %441 = arith.mulf %432, %415 : vector<2x32xf32>
    %442 = arith.mulf %426, %434 : vector<2x32xf32>
    %443 = arith.addf %441, %442 : vector<2x32xf32>
    %444 = math.tanh %443 : vector<2x32xf32>
    %445 = arith.mulf %440, %444 : vector<2x32xf32>
    %446 = vector.extract_strided_slice %247 {offsets = [14, 0], sizes = [2, 128], strides = [1, 1]} : vector<16x128xf32> to vector<2x128xf32>
    %cst_89 = arith.constant dense<0.000000e+00> : vector<2x128xf32>
    %447 = tpu.matmul %445, %242, %cst_89 {dimension_numbers = #tpu.dot_dimension_numbers<[1], [0], [0], [1], [0, 0, 1, 1], [], []>} : vector<2x32xf32>, vector<32x128xf32>, vector<2x128xf32> -> vector<2x128xf32>
    %448 = arith.addf %446, %447 : vector<2x128xf32>
    %449 = vector.extract_strided_slice %448 {offsets = [0, 0], sizes = [2, 32], strides = [1, 1]} : vector<2x128xf32> to vector<2x32xf32>
    %450 = arith.negf %449 : vector<2x32xf32>
    %451 = math.exp %450 : vector<2x32xf32>
    %cst_90 = arith.constant 1.000000e+00 : f32
    %452 = vector.broadcast %cst_90 : f32 to vector<2x32xf32>
    %453 = arith.addf %452, %451 : vector<2x32xf32>
    %454 = arith.divf %452, %453 : vector<2x32xf32>
    %455 = vector.extract_strided_slice %448 {offsets = [0, 32], sizes = [2, 32], strides = [1, 1]} : vector<2x128xf32> to vector<2x32xf32>
    %456 = arith.negf %455 : vector<2x32xf32>
    %457 = math.exp %456 : vector<2x32xf32>
    %cst_91 = arith.constant 1.000000e+00 : f32
    %458 = vector.broadcast %cst_91 : f32 to vector<2x32xf32>
    %459 = arith.addf %458, %457 : vector<2x32xf32>
    %460 = arith.divf %458, %459 : vector<2x32xf32>
    %461 = vector.extract_strided_slice %448 {offsets = [0, 64], sizes = [2, 32], strides = [1, 1]} : vector<2x128xf32> to vector<2x32xf32>
    %462 = math.tanh %461 : vector<2x32xf32>
    %463 = vector.extract_strided_slice %448 {offsets = [0, 96], sizes = [2, 32], strides = [1, 1]} : vector<2x128xf32> to vector<2x32xf32>
    %464 = arith.negf %463 : vector<2x32xf32>
    %465 = math.exp %464 : vector<2x32xf32>
    %cst_92 = arith.constant 1.000000e+00 : f32
    %466 = vector.broadcast %cst_92 : f32 to vector<2x32xf32>
    %467 = arith.addf %466, %465 : vector<2x32xf32>
    %468 = arith.divf %466, %467 : vector<2x32xf32>
    %469 = arith.mulf %460, %443 : vector<2x32xf32>
    %470 = arith.mulf %454, %462 : vector<2x32xf32>
    %471 = arith.addf %469, %470 : vector<2x32xf32>
    %472 = math.tanh %471 : vector<2x32xf32>
    %473 = arith.mulf %468, %472 : vector<2x32xf32>
    %c0_93 = arith.constant 0 : index
    %c0_94 = arith.constant 0 : index
    %474 = vector.load %arg7[%c0_93, %c0_94] : memref<32x128xf32, #tpu.memory_space<vmem>>, vector<32x128xf32>
    %cst_95 = arith.constant dense<0.000000e+00> : vector<2x128xf32>
    %475 = tpu.matmul %473, %474, %cst_95 {dimension_numbers = #tpu.dot_dimension_numbers<[1], [0], [0], [1], [0, 0, 1, 1], [], []>} : vector<2x32xf32>, vector<32x128xf32>, vector<2x128xf32> -> vector<2x128xf32>
    %c0_96 = arith.constant 0 : index
    %c0_97 = arith.constant 0 : index
    %476 = vector.load %arg8[%c0_96, %c0_97] : memref<1x128xf32, #tpu.memory_space<vmem>>, vector<1x128xf32>
    %477 = vector.broadcast %476 : vector<1x128xf32> to vector<2x128xf32>
    %478 = arith.addf %475, %477 : vector<2x128xf32>
    %c0_98 = arith.constant 0 : index
    %c0_99 = arith.constant 0 : index
    %479 = vector.load %arg9[%c0_98, %c0_99] : memref<2x128xf32, #tpu.memory_space<vmem>>, vector<2x128xf32>
    tpu.vector_store %arg9[%c0_98, %c0_99], %478 {strides = array<i32>} : memref<2x128xf32, #tpu.memory_space<vmem>>, vector<2x128xf32>,
    return
  }
}

</mosaic_0001>

<bundles_post_ra>
// kernel: tpu_custom_call.1
= control target key start
LH: loop header
LB: loop body
LE: loop exit
PB: predicated region body
PF: predicated region fallthrough
CT: control target
= control target key end

     0   :  { %14 = vsyncpa [#allocation4], 0  ;;  %s3331_s0 = inlined_call_operand.hbm [shape: f32[16,16], index: 0, kind: input, shape index: {}]   ;;  %s3332_s1 = inlined_call_operand.hbm [shape: f32[16,128], index: 1, kind: input, shape index: {}]   ;;  %s3333_s2 = inlined_call_operand.hbm [shape: f32[32,128], index: 2, kind: input, shape index: {}]   ;;  %s3334_s3 = inlined_call_operand.vmem [shape: f32[1,128], index: 3, kind: input, shape index: {}]   ;;  %s3335_s4 = inlined_call_operand.hbm [shape: f32[32,128], index: 4, kind: input, shape index: {}]   ;;  %s3336_s5 = inlined_call_operand.hbm [shape: f32[32,128], index: 5, kind: input, shape index: {}]   ;;  %s3337_s6 = inlined_call_operand.vmem [shape: f32[1,128], index: 6, kind: input, shape index: {}]   ;;  %s3338_s7 = inlined_call_operand.hbm [shape: f32[32,128], index: 7, kind: input, shape index: {}]   ;;  %s3339_s8 = inlined_call_operand.vmem [shape: f32[1,128], index: 8, kind: input, shape index: {}]   ;;  %s3340_s9 = inlined_call_operand.hbm [shape: f32[2,128], index: 9, kind: output, shape index: {}]  }
   0x1   :  { %15 = vsyncpa [#allocation7], 0 }
   0x2   :  { %16 = vsyncpa [#allocation10], 0 }
   0x3   :  { %17 = vsyncpa [#allocation13], 0 }
   0x4   :  { %18 = vsyncpa [#allocation5], 0  ;;  %s2889_s30 = smov [#allocation6]   ;;  %s2890_s11 = smov [#allocation9]  }
   0x5   :  { %s36_s10 = sshll.u32 %s2889_s30, 4  ;;  %s62_s12 = sshll.u32 %s2890_s11, 4  ;;  %s37_s10 = int_to_ptr.vmem [resolvable:$true] %s36_s10  ;;  %s2953_s12 = int_to_ptr.vmem [resolvable:$true] %s62_s12 }
   0x6   :  { %s2725_s15 = scalar_lea.hbm %s3332_s1, 256 }
   0x7   :  { %p2726_p0 = scmp.ne.s32.totalorder %s3332_s1, %s2725_s15  ;;  %p2729_p1 = scmp.lt.u32.totalorder %s2725_s15, %s3332_s1 }
   0x9   :  { %p2731_p2 = pnand %p2729_p1, %p2726_p0 }
   0xb   :  { %2734 = shalt.err (!%p2731_p2)
}
   0xc   :  { %s2735_s20 = scalar_lea.vmem %s37_s10, 256  ;;  %p2740_p4 = scmp.lt.s32.totalorder %s37_s10, %s37_s10 }
   0xd   :  { %p2736_p3 = scmp.ne.s32.totalorder %s37_s10, %s2735_s20  ;;  %p2741_p5 = scmp.lt.s32.totalorder %s2735_s20, %s2735_s20 }
   0xf   :  { %p2742_p6 = por %p2741_p5, %p2740_p4 }
  0x11   :  { %p2743_p7 = pnand %p2742_p6, %p2736_p3 }
  0x13   :  { %2746 = shalt.err (!%p2743_p7)
}
  0x14   :  { %s2891_s21 = smov 128   ;;  %s2892_s22 = smov 8  }
  0x15   :  { %42 = dma.hbm_to_vmem [thread:$0]  %s3332_s1, 256, %s37_s10, [#allocation7], %s2891_s21, %s2891_s21, %s2892_s22  }
  0x16   :  { %s2747_s27 = scalar_lea.hbm %s3335_s4, 512 }
  0x17   :  { %p2748_p8 = scmp.ne.s32.totalorder %s3335_s4, %s2747_s27  ;;  %p2751_p9 = scmp.lt.u32.totalorder %s2747_s27, %s3335_s4 }
  0x19   :  { %p2753_p10 = pnand %p2751_p9, %p2748_p8 }
  0x1b   :  { %2756 = shalt.err (!%p2753_p10)
}
  0x1c   :  { %s2757_s13 = scalar_lea.vmem %s2953_s12, 512  ;;  %p2762_p12 = scmp.lt.s32.totalorder %s2953_s12, %s2953_s12 }
  0x1d   :  { %p2758_p11 = scmp.ne.s32.totalorder %s2953_s12, %s2757_s13  ;;  %p2763_p13 = scmp.lt.s32.totalorder %s2757_s13, %s2757_s13 }
  0x1f   :  { %p2764_p0 = por %p2763_p13, %p2762_p12 }
  0x21   :  { %p2765_p1 = pnand %p2764_p0, %p2758_p11 }
  0x23   :  { %2768 = shalt.err (!%p2765_p1)
}
  0x24   :  { %68 = dma.hbm_to_vmem [thread:$0]  %s3335_s4, 512, %s2953_s12, [#allocation10], %s2891_s21, %s2891_s21, %s2892_s22  }
  0x25   :  { %s2893_s14 = smov [#allocation3]   ;;  %s2894_s16 = smov [#allocation8]  }
  0x26   :  { %s24_s15 = sshll.u32 %s2893_s14, 4  ;;  %s48_s17 = sshll.u32 %s2894_s16, 4  ;;  %s25_s15 = int_to_ptr.vmem [resolvable:$true] %s24_s15  ;;  %s2990_s17 = int_to_ptr.vmem [resolvable:$true] %s48_s17 }
  0x27   :  { %s2769_s20 = scalar_lea.hbm %s3331_s0, 256 }
  0x28   :  { %p2770_p2 = scmp.ne.s32.totalorder %s3331_s0, %s2769_s20  ;;  %p2773_p3 = scmp.lt.u32.totalorder %s2769_s20, %s3331_s0 }
  0x2a   :  { %p2775_p4 = pnand %p2773_p3, %p2770_p2 }
  0x2c   :  { %2778 = shalt.err (!%p2775_p4)
}
  0x2d   :  { %s2779_s4 = scalar_lea.vmem %s25_s15, 256  ;;  %p2784_p6 = scmp.lt.s32.totalorder %s25_s15, %s25_s15 }
  0x2e   :  { %p2780_p5 = scmp.ne.s32.totalorder %s25_s15, %s2779_s4  ;;  %p2785_p7 = scmp.lt.s32.totalorder %s2779_s4, %s2779_s4 }
  0x30   :  { %p2786_p8 = por %p2785_p7, %p2784_p6 }
  0x32   :  { %p2787_p9 = pnand %p2786_p8, %p2780_p5 }
  0x34   :  { %2790 = shalt.err (!%p2787_p9)
}
  0x35   :  { %30 = dma.hbm_to_vmem [thread:$0]  %s3331_s0, 256, %s25_s15, [#allocation4], %s2891_s21, %s2891_s21, %s2892_s22  }
  0x36   :  { %s2791_s30 = scalar_lea.hbm %s3333_s2, 512 }
  0x37   :  { %p2792_p10 = scmp.ne.s32.totalorder %s3333_s2, %s2791_s30  ;;  %p2795_p11 = scmp.lt.u32.totalorder %s2791_s30, %s3333_s2 }
  0x39   :  { %p2797_p12 = pnand %p2795_p11, %p2792_p10 }
  0x3b   :  { %2800 = shalt.err (!%p2797_p12)
}
  0x3c   :  { %s2801_s14 = scalar_lea.vmem %s2990_s17, 512  ;;  %p2806_p0 = scmp.lt.s32.totalorder %s2990_s17, %s2990_s17 }
  0x3d   :  { %p2802_p13 = scmp.ne.s32.totalorder %s2990_s17, %s2801_s14  ;;  %p2807_p1 = scmp.lt.s32.totalorder %s2801_s14, %s2801_s14 }
  0x3f   :  { %p2808_p2 = por %p2807_p1, %p2806_p0 }
  0x41   :  { %p2809_p3 = pnand %p2808_p2, %p2802_p13 }
  0x43   :  { %2812 = shalt.err (!%p2809_p3)
}
  0x44   :  { %54 = dma.hbm_to_vmem [thread:$0]  %s3333_s2, 512, %s2990_s17, [#allocation7], %s2891_s21, %s2891_s21, %s2892_s22  }
  0x45   :  { %s2895_s16 = smov [#allocation11]   ;;  %s2896_s19 = smov [#allocation12]  }
  0x46   :  { %s74_s18 = sshll.u32 %s2895_s16, 4  ;;  %s88_s20 = sshll.u32 %s2896_s19, 4  ;;  %s75_s18 = int_to_ptr.vmem [resolvable:$true] %s74_s18  ;;  %s3027_s20 = int_to_ptr.vmem [resolvable:$true] %s88_s20 }
  0x47   :  { %s2813_s25 = scalar_lea.hbm %s3336_s5, 512 }
  0x48   :  { %p2814_p4 = scmp.ne.s32.totalorder %s3336_s5, %s2813_s25  ;;  %p2817_p5 = scmp.lt.u32.totalorder %s2813_s25, %s3336_s5 }
  0x4a   :  { %p2819_p6 = pnand %p2817_p5, %p2814_p4 }
  0x4c   :  { %2822 = shalt.err (!%p2819_p6)
}
  0x4d   :  { %s2823_s2 = scalar_lea.vmem %s75_s18, 512  ;;  %p2828_p8 = scmp.lt.s32.totalorder %s75_s18, %s75_s18 }
  0x4e   :  { %p2824_p7 = scmp.ne.s32.totalorder %s75_s18, %s2823_s2  ;;  %p2829_p9 = scmp.lt.s32.totalorder %s2823_s2, %s2823_s2 }
  0x50   :  { %p2830_p10 = por %p2829_p9, %p2828_p8 }
  0x52   :  { %p2831_p11 = pnand %p2830_p10, %p2824_p7 }
  0x54   :  { %2834 = shalt.err (!%p2831_p11)
}
  0x55   :  { %80 = dma.hbm_to_vmem [thread:$0]  %s3336_s5, 512, %s75_s18, [#allocation10], %s2891_s21, %s2891_s21, %s2892_s22  }
  0x56   :  { %s2835_s11 = scalar_lea.hbm %s3338_s7, 512 }
  0x57   :  { %p2836_p12 = scmp.ne.s32.totalorder %s3338_s7, %s2835_s11  ;;  %p2839_p13 = scmp.lt.u32.totalorder %s2835_s11, %s3338_s7 }
  0x59   :  { %p2841_p0 = pnand %p2839_p13, %p2836_p12 }
  0x5b   :  { %2844 = shalt.err (!%p2841_p0)
}
  0x5c   :  { %s2845_s0 = scalar_lea.vmem %s3027_s20, 512  ;;  %p2850_p2 = scmp.lt.s32.totalorder %s3027_s20, %s3027_s20 }
  0x5d   :  { %p2846_p1 = scmp.ne.s32.totalorder %s3027_s20, %s2845_s0  ;;  %p2851_p3 = scmp.lt.s32.totalorder %s2845_s0, %s2845_s0 }
  0x5f   :  { %p2852_p4 = por %p2851_p3, %p2850_p2 }
  0x61   :  { %p2853_p5 = pnand %p2852_p4, %p2846_p1 }
  0x63   :  { %2856 = shalt.err (!%p2853_p5)
}
  0x64   :  { %94 = dma.hbm_to_vmem [thread:$0]  %s3338_s7, 512, %s3027_s20, [#allocation13], %s2891_s21, %s2891_s21, %s2892_s22  }
  0x65   :  { %2879 = dma.done.wait [#allocation4], 256  }
  0x66   :  { %2880 = vsyncadd [#allocation4], 4294967040 }
  0x67   :  { %2881 = dma.done.wait [#allocation7], 768  }
  0x68   :  { %2882 = vsyncadd [#allocation7], 4294966528 }
  0x69   :  { %2883 = dma.done.wait [#allocation10], 1024  }
  0x6a   :  { %2884 = vsyncadd [#allocation10], 4294966272 }
  0x6b   :  { %2885 = dma.done.wait [#allocation13], 512  }
  0x6c   :  { %2886 = vsyncadd [#allocation13], 4294966784  ;;  %v2897_v0 = vmov 0.0|0.0   ;;  %vm2898_vm0 = vmmov 0   ;;  %v2899_v1 = vmov 0.0   ;;  %vm130_vm1 = vcmask 130048  }
  0x6d   :  { %2473 = vmatprep.subr.bf16.mxu1 %v2897_v0  ;;  %2279 = vmatprep.mubr.msk.f32.mxu1 %vm2898_vm0, %v2899_v1  ;;  %v115_v2 = vld [vmem:[#allocation6] sm:$0xff]  ;;  %v116_v3 = vld [vmem:[#allocation6 + $0x8] sm:$0xff]  ;;  %v117_v4 = vld [vmem:[#allocation8] sm:$0xff]  ;;  %s2900_s22 = smov 64   ;;  %vm315_vm2 = vcmask 254976   ;;  %vm212_vm3 = vcmask 261120  }
  0x6e   :  { %v2469_v5 = vpack.c.bf16 %v116_v3, %v115_v2  ;;  %v118_v6 = vld [vmem:[#allocation8 + $0x8] sm:$0xff]  ;;  %v122_v7 = vld [vmem:[#allocation3] sm:$0xff]  ;;  %v119_v9 = vld [vmem:[#allocation8 + $0x10] sm:$0xff]  ;;  %vm424_vm4 = vcmask 257026   ;;  %vm648_vm5 = vcmask 261126   ;;  %vm536_vm6 = vcmask 259076  }
  0x6f   :  { %v3067_v8 = vpack.c.bf16 %v118_v6, %v117_v4  ;;  %2268 = vmatprep.mubr.msk.f32.mxu0 %vm130_vm1, %v122_v7  ;;  %v120_v10 = vld [vmem:[#allocation8 + $0x18] sm:$0xff]  ;;  %v123_v11 = vld [vmem:[#allocation3 + $0x8] sm:$0xff]  ;;  %v2131_v13 = vld [vmem:[%s3334_s3] ss:$0 sm:$0xff]  ;;  %s2901_s3 = smov 32   ;;  %s2902_s20 = smov [#allocation14]  }
  0x70   :  { %2470 = vmatprep.subr.bf16.mxu0 %v2469_v5  ;;  %v3071_v12 = vpack.c.bf16 %v120_v10, %v119_v9  ;;  %s2119_s23 = sshll.u32 %s2902_s20, 4  ;;  %s2120_s23 = int_to_ptr.vmem [resolvable:$true] %s2119_s23 }
  0x71   :  { %2475 = vmatpush3.bf16.msra.mxu1 %v3067_v8  ;;  %2472 = vmatpush3.bf16.msra.mxu0 %v2469_v5  ;;  %s2857_s24 = scalar_lea.vmem %s2120_s23, 32  ;;  %p2862_p7 = scmp.lt.s32.totalorder %s2120_s23, %s2120_s23 }
  0x72   :  { %2476 = vmatprep.subr.bf16.mxu1 %v2897_v0  ;;  %2479 = vmatprep.subr.bf16.mxu0 %v2897_v0  ;;  %p2858_p6 = scmp.ne.s32.totalorder %s2120_s23, %s2857_s24  ;;  %p2863_p8 = scmp.lt.s32.totalorder %s2857_s24, %s2857_s24 }
  0x74   :  { %2269 = vmatmul.mubr.msk.f32.vlgmr.msra.gmra.mrb[0].mxu0 %vm130_vm1, %v123_v11  ;;  %p2864_p9 = por %p2863_p8, %p2862_p7 }
  0x75   :  { %2478 = vmatpush3.bf16.msra.mxu1 %v3071_v12  ;;  %2481 = vmatpush3.bf16.msra.mxu0 %v3067_v8 }
  0x76   :  { %2482 = vmatprep.subr.bf16.mxu0 %v2897_v0  ;;  %2290 = vmatprep.mubr.msk.f32.mxu0 %vm2898_vm0, %v2899_v1  ;;  %p2865_p10 = pnand %p2864_p9, %p2858_p6 }
  0x77   :  { %2485 = vmatprep.subr.bf16.mxu1 %v2897_v0 }
  0x78   :  { %2280 = vmatmul.mubr.f32.vlgmr.msra.gmra.mrb[0].mxu1 %v2899_v1 }
  0x79   :  { %2484 = vmatpush3.bf16.msra.mxu0 %v3071_v12  ;;  %2487 = vmatpush3.bf16.msra.mxu1 %v3067_v8 }
  0x7a   :  { %2488 = vmatprep.subr.bf16.mxu1 %v2897_v0  ;;  %2301 = vmatprep.mubr.msk.f32.mxu1 %vm2898_vm0, %v2899_v1 }
  0x7b   :  { %2491 = vmatprep.subr.bf16.mxu0 %v2897_v0 }
  0x7d   :  { %2490 = vmatpush3.bf16.msra.mxu1 %v3071_v12 }
  0x7e   :  { %2497 = vmatprep.subr.bf16.mxu1 %v2897_v0 }
 0x147   :  { %v2270_v14 = vpop.f32.mrb[0].mxu0 }
 0x148   :  { %v3094_v15 = vadd.f32 %v2270_v14, %v2131_v13  ;;  %v203_v16 = vpop.f32.mrb[1].mxu0 }
 0x149   :  { %v3096_v17 = vadd.f32 %v2131_v13, %v203_v16 }
 0x14b   :  { %v282_v18 = vpop.f32.mrb[0].mxu1 }
 0x14c   :  { %v286_v19 = vadd.f32 %v282_v18, %v3096_v17  ;;  %v2281_v20 = vpop.f32.mrb[1].mxu1 }
 0x14e   :  { %2597 = vtanh.f32 %v286_v19  ;;  %v2134_v22 = vmul.f32 -1.442695, %v286_v19 }
 0x150   :  { %2599 = vpow2.f32 %v2134_v22 }
 0x158   :  { %v2598_v21 = vpop.eup %2597 }
 0x159   :  { %296 = vrot.lane.b32.xlu0 %v2598_v21, %s2900_s22 }
 0x15a   :  { %v2600_v23 = vpop.eup %2599 }
 0x15b   :  { %v290_v24 = vadd.f32 1.0, %v2600_v23 }
 0x15d   :  { %2601 = vrcp.f32 %v290_v24 }
 0x167   :  { %v2602_v25 = vpop.eup %2601 }
 0x168   :  { %v294_v28 = vmul.f32 0.0, %v2602_v25 }
 0x1cb   :  { %v297_v26 = vpop.permute.xlu0 %296 }
 0x1cc   :  { %v299_v27 = vmul.f32 %v2602_v25, %v297_v26 }
 0x1ce   :  { %301 = vrot.lane.b32.xlu0 %v299_v27, %s2901_s3 }
 0x240   :  { %v302_v29 = vpop.permute.xlu0 %301 }
 0x241   :  { %v304_v30 = vadd.f32 %v302_v29, %v294_v28 }
 0x243   :  { %2603 = vtanh.f32 %v304_v30  ;;  %v401_v46 = vrot.slane %v304_v30, 6 }
 0x24d   :  { %v2604_v31 = vpop.eup %2603 }
 0x24e   :  { %307 = vrot.lane.b32.xlu1 %v2604_v31, %s2900_s22 }
 0x2c0   :  { %v308_v32 = vpop.permute.xlu1 %307 }
 0x2c1   :  { %v310_v33 = vmul.f32 %v2602_v25, %v308_v32 }
 0x2c3   :  { %312 = vrot.lane.b32.xlu1 %v310_v33, %s2901_s3 }
 0x335   :  { %v313_v34 = vpop.permute.xlu1 %312 }
 0x336   :  { %316 = vst.msk [vmem:[#allocation2] sm:$0x3] %vm315_vm2, %v313_v34  ;;  %2291 = vmatmul.mubr.msk.f32.vlgmr.msra.gmra.mrb[2].mxu0 %vm212_vm3, %v313_v34 }
 0x337   :  { %2493 = vmatpush3.bf16.msra.mxu0 %v3067_v8  ;;  %2312 = vmatprep.mubr.msk.f32.mxu0 %vm2898_vm0, %v2899_v1 }
 0x338   :  { %2494 = vmatprep.subr.bf16.mxu0 %v2897_v0 }
 0x33b   :  { %2496 = vmatpush3.bf16.msra.mxu0 %v3071_v12 }
 0x33c   :  { %2503 = vmatprep.subr.bf16.mxu0 %v2897_v0 }
 0x409   :  { %v385_v35 = vpop.f32.mrb[2].mxu0 }
 0x40a   :  { %v390_v36 = vrot.slane %v385_v35, 6  ;;  %v2292_v37 = vpop.f32.mrb[3].mxu0 }
 0x40c   :  { %v392_v38 = vadd.f32 %v390_v36, %v3096_v17 }
 0x40e   :  { %2605 = vtanh.f32 %v392_v38  ;;  %v2136_v40 = vmul.f32 -1.442695, %v392_v38 }
 0x410   :  { %2607 = vpow2.f32 %v2136_v40 }
 0x418   :  { %v2606_v39 = vpop.eup %2605 }
 0x419   :  { %405 = vrot.lane.b32.xlu0 %v2606_v39, %s2900_s22 }
 0x41a   :  { %v2608_v41 = vpop.eup %2607 }
 0x41b   :  { %v396_v42 = vadd.f32 1.0, %v2608_v41 }
 0x41d   :  { %2609 = vrcp.f32 %v396_v42 }
 0x427   :  { %v2610_v43 = vpop.eup %2609 }
 0x428   :  { %v403_v47 = vmul.f32 %v2610_v43, %v401_v46 }
 0x48b   :  { %v406_v44 = vpop.permute.xlu0 %405 }
 0x48c   :  { %v408_v45 = vmul.f32 %v2610_v43, %v406_v44 }
 0x48e   :  { %410 = vrot.lane.b32.xlu1 %v408_v45, %s2901_s3 }
 0x500   :  { %v411_v48 = vpop.permute.xlu1 %410 }
 0x501   :  { %v413_v49 = vadd.f32 %v411_v48, %v403_v47 }
 0x503   :  { %2611 = vtanh.f32 %v413_v49  ;;  %v513_v4 = vrot.slane %v413_v49, 6 }
 0x50d   :  { %v2612_v50 = vpop.eup %2611 }
 0x50e   :  { %416 = vrot.lane.b32.xlu0 %v2612_v50, %s2900_s22 }
 0x580   :  { %v417_v51 = vpop.permute.xlu0 %416 }
 0x581   :  { %v3115_v52 = vmul.f32 %v2610_v43, %v417_v51 }
 0x583   :  { %v426_v53 = vrot.slane %v3115_v52, 2 }
 0x585   :  { %427 = vrot.lane.b32.xlu1 %v426_v53, %s2901_s3 }
 0x5f7   :  { %v428_v54 = vpop.permute.xlu1 %427 }
 0x5f8   :  { %2302 = vmatmul.mubr.msk.f32.vlgmr.msra.gmra.mrb[2].mxu1 %vm212_vm3, %v428_v54 }
 0x5f9   :  { %2499 = vmatpush3.bf16.msra.mxu1 %v3067_v8  ;;  %2323 = vmatprep.mubr.msk.f32.mxu1 %vm2898_vm0, %v2899_v1 }
 0x5fa   :  { %2500 = vmatprep.subr.bf16.mxu1 %v2897_v0 }
 0x5fd   :  { %2502 = vmatpush3.bf16.msra.mxu1 %v3071_v12 }
 0x5fe   :  { %2509 = vmatprep.subr.bf16.mxu1 %v2897_v0 }
 0x6cb   :  { %v497_v55 = vpop.f32.mrb[2].mxu1 }
 0x6cc   :  { %v502_v56 = vrot.slane %v497_v55, 4  ;;  %v2303_v57 = vpop.f32.mrb[3].mxu1 }
 0x6ce   :  { %v504_v58 = vadd.f32 %v502_v56, %v3096_v17 }
 0x6d0   :  { %2613 = vtanh.f32 %v504_v58  ;;  %v2138_v60 = vmul.f32 -1.442695, %v504_v58 }
 0x6d2   :  { %2615 = vpow2.f32 %v2138_v60 }
 0x6da   :  { %v2614_v59 = vpop.eup %2613 }
 0x6db   :  { %517 = vrot.lane.b32.xlu0 %v2614_v59, %s2900_s22 }
 0x6dc   :  { %v2616_v61 = vpop.eup %2615 }
 0x6dd   :  { %v508_v62 = vadd.f32 1.0, %v2616_v61 }
 0x6df   :  { %2617 = vrcp.f32 %v508_v62 }
 0x6e9   :  { %v2618_v63 = vpop.eup %2617 }
 0x6ea   :  { %v515_v5 = vmul.f32 %v2618_v63, %v513_v4 }
 0x74d   :  { %v518_v2 = vpop.permute.xlu0 %517 }
 0x74e   :  { %v520_v3 = vmul.f32 %v2618_v63, %v518_v2 }
 0x750   :  { %522 = vrot.lane.b32.xlu1 %v520_v3, %s2901_s3 }
 0x7c2   :  { %v523_v6 = vpop.permute.xlu1 %522 }
 0x7c3   :  { %v525_v7 = vadd.f32 %v523_v6, %v515_v5 }
 0x7c5   :  { %2619 = vtanh.f32 %v525_v7  ;;  %v625_v28 = vrot.slane %v525_v7, 6 }
 0x7cf   :  { %v2620_v9 = vpop.eup %2619 }
 0x7d0   :  { %528 = vrot.lane.b32.xlu0 %v2620_v9, %s2900_s22 }
 0x842   :  { %v529_v10 = vpop.permute.xlu0 %528 }
 0x843   :  { %v3130_v11 = vmul.f32 %v2618_v63, %v529_v10 }
 0x845   :  { %v538_v13 = vrot.slane %v3130_v11, 4 }
 0x847   :  { %539 = vrot.lane.b32.xlu1 %v538_v13, %s2901_s3 }
 0x8b9   :  { %v540_v14 = vpop.permute.xlu1 %539 }
 0x8ba   :  { %2313 = vmatmul.mubr.msk.f32.vlgmr.msra.gmra.mrb[4].mxu0 %vm212_vm3, %v540_v14 }
 0x8bb   :  { %2505 = vmatpush3.bf16.msra.mxu0 %v3067_v8  ;;  %2334 = vmatprep.mubr.msk.f32.mxu0 %vm2898_vm0, %v2899_v1 }
 0x8bc   :  { %2506 = vmatprep.subr.bf16.mxu0 %v2897_v0 }
 0x8bf   :  { %2508 = vmatpush3.bf16.msra.mxu0 %v3071_v12 }
 0x8c0   :  { %2515 = vmatprep.subr.bf16.mxu0 %v2897_v0 }
 0x98d   :  { %v609_v16 = vpop.f32.mrb[4].mxu0 }
 0x98e   :  { %v614_v18 = vrot.slane %v609_v16, 2  ;;  %v2314_v19 = vpop.f32.mrb[5].mxu0 }
 0x990   :  { %v616_v20 = vadd.f32 %v614_v18, %v3096_v17 }
 0x992   :  { %2621 = vtanh.f32 %v616_v20  ;;  %v2140_v22 = vmul.f32 -1.442695, %v616_v20 }
 0x994   :  { %2623 = vpow2.f32 %v2140_v22 }
 0x99c   :  { %v2622_v21 = vpop.eup %2621 }
 0x99d   :  { %629 = vrot.lane.b32.xlu0 %v2622_v21, %s2900_s22 }
 0x99e   :  { %v2624_v23 = vpop.eup %2623 }
 0x99f   :  { %v620_v24 = vadd.f32 1.0, %v2624_v23 }
 0x9a1   :  { %2625 = vrcp.f32 %v620_v24 }
 0x9ab   :  { %v2626_v25 = vpop.eup %2625 }
 0x9ac   :  { %v627_v29 = vmul.f32 %v2626_v25, %v625_v28 }
 0xa0f   :  { %v630_v26 = vpop.permute.xlu0 %629 }
 0xa10   :  { %v632_v27 = vmul.f32 %v2626_v25, %v630_v26 }
 0xa12   :  { %634 = vrot.lane.b32.xlu1 %v632_v27, %s2901_s3 }
 0xa84   :  { %v635_v30 = vpop.permute.xlu1 %634 }
 0xa85   :  { %v637_v31 = vadd.f32 %v635_v30, %v627_v29 }
 0xa87   :  { %2627 = vtanh.f32 %v637_v31  ;;  %v734_v46 = vrot.slane %v637_v31, 6 }
 0xa91   :  { %v2628_v17 = vpop.eup %2627 }
 0xa92   :  { %640 = vrot.lane.b32.xlu0 %v2628_v17, %s2900_s22 }
 0xb04   :  { %v641_v32 = vpop.permute.xlu0 %640 }
 0xb05   :  { %v3145_v33 = vmul.f32 %v2626_v25, %v641_v32 }
 0xb07   :  { %v650_v34 = vrot.slane %v3145_v33, 6 }
 0xb09   :  { %651 = vrot.lane.b32.xlu1 %v650_v34, %s2901_s3 }
 0xb7b   :  { %v652_v35 = vpop.permute.xlu1 %651 }
 0xb7c   :  { %2324 = vmatmul.mubr.msk.f32.vlgmr.msra.gmra.mrb[4].mxu1 %vm212_vm3, %v652_v35 }
 0xb7d   :  { %2511 = vmatpush3.bf16.msra.mxu1 %v3067_v8  ;;  %2345 = vmatprep.mubr.msk.f32.mxu1 %vm2898_vm0, %v2899_v1 }
 0xb7e   :  { %2512 = vmatprep.subr.bf16.mxu1 %v2897_v0 }
 0xb81   :  { %2514 = vmatpush3.bf16.msra.mxu1 %v3071_v12 }
 0xc4f   :  { %v721_v36 = vpop.f32.mrb[4].mxu1 }
 0xc50   :  { %v725_v37 = vadd.f32 %v721_v36, %v3094_v15  ;;  %v2325_v38 = vpop.f32.mrb[5].mxu1 }
 0xc52   :  { %2629 = vtanh.f32 %v725_v37  ;;  %v2142_v40 = vmul.f32 -1.442695, %v725_v37 }
 0xc54   :  { %2631 = vpow2.f32 %v2142_v40 }
 0xc5c   :  { %v2630_v39 = vpop.eup %2629 }
 0xc5d   :  { %738 = vrot.lane.b32.xlu0 %v2630_v39, %s2900_s22 }
 0xc5e   :  { %v2632_v41 = vpop.eup %2631 }
 0xc5f   :  { %v729_v42 = vadd.f32 1.0, %v2632_v41 }
 0xc61   :  { %2633 = vrcp.f32 %v729_v42 }
 0xc6b   :  { %v2634_v43 = vpop.eup %2633 }
 0xc6c   :  { %v736_v47 = vmul.f32 %v2634_v43, %v734_v46 }
 0xccf   :  { %v739_v44 = vpop.permute.xlu0 %738 }
 0xcd0   :  { %v741_v45 = vmul.f32 %v2634_v43, %v739_v44 }
 0xcd2   :  { %743 = vrot.lane.b32.xlu1 %v741_v45, %s2901_s3 }
 0xd44   :  { %v744_v48 = vpop.permute.xlu1 %743 }
 0xd45   :  { %v746_v49 = vadd.f32 %v744_v48, %v736_v47 }
 0xd47   :  { %2635 = vtanh.f32 %v746_v49 }
 0xd51   :  { %v2636_v50 = vpop.eup %2635 }
 0xd52   :  { %749 = vrot.lane.b32.xlu0 %v2636_v50, %s2900_s22 }
 0xdc4   :  { %v750_v51 = vpop.permute.xlu0 %749 }
 0xdc5   :  { %v752_v53 = vmul.f32 %v2634_v43, %v750_v51 }
 0xdc7   :  { %754 = vrot.lane.b32.xlu1 %v752_v53, %s2901_s3 }
 0xe39   :  { %v755_v54 = vpop.permute.xlu1 %754 }
 0xe3a   :  { %757 = vst.msk [vmem:[#allocation2 + $0x8] sm:$0x3] %vm315_vm2, %v755_v54  ;;  %2335 = vmatmul.mubr.msk.f32.vlgmr.msra.gmra.mrb[6].mxu0 %vm212_vm3, %v755_v54  ;;  %v1089_v54 = vld [vmem:[#allocation9 + $0x8] sm:$0xff] }
 0xe3b   :  { %2517 = vmatpush3.bf16.msra.mxu0 %v3067_v8  ;;  %2356 = vmatprep.mubr.msk.f32.mxu0 %vm2898_vm0, %v2899_v1 }
 0xe3c   :  { %2518 = vmatprep.subr.bf16.mxu0 %v2897_v0 }
 0xe3f   :  { %2520 = vmatpush3.bf16.msra.mxu0 %v3071_v12  ;;  %v842_v12 = vrot.slane %v746_v49, 6 }
 0xe40   :  { %2529 = vmatprep.subr.bf16.mxu0 %v2897_v0 }
 0xf0d   :  { %v826_v55 = vpop.f32.mrb[6].mxu0 }
 0xf0e   :  { %v831_v56 = vrot.slane %v826_v55, 6  ;;  %v2336_v57 = vpop.f32.mrb[7].mxu0 }
 0xf0f   :  { %v1093_v57 = vld [vmem:[#allocation11 + $0x8] sm:$0xff] }
 0xf10   :  { %v833_v58 = vadd.f32 %v831_v56, %v3094_v15  ;;  %v1092_v56 = vld [vmem:[#allocation11] sm:$0xff] }
 0xf12   :  { %2637 = vtanh.f32 %v833_v58  ;;  %v2144_v60 = vmul.f32 -1.442695, %v833_v58  ;;  %v1090_v58 = vld [vmem:[#allocation9 + $0x10] sm:$0xff] }
 0xf14   :  { %2639 = vpow2.f32 %v2144_v60  ;;  %v1091_v60 = vld [vmem:[#allocation9 + $0x18] sm:$0xff] }
 0xf1c   :  { %v2638_v59 = vpop.eup %2637 }
 0xf1d   :  { %846 = vrot.lane.b32.xlu0 %v2638_v59, %s2900_s22  ;;  %v3201_v59 = vpack.c.bf16 %v1093_v57, %v1092_v56 }
 0xf1e   :  { %v2640_v8 = vpop.eup %2639 }
 0xf1f   :  { %v837_v61 = vadd.f32 1.0, %v2640_v8  ;;  %v1094_v8 = vld [vmem:[#allocation11 + $0x10] sm:$0xff] }
 0xf21   :  { %2641 = vrcp.f32 %v837_v61  ;;  %v1095_v61 = vld [vmem:[#allocation11 + $0x18] sm:$0xff] }
 0xf2b   :  { %v2642_v62 = vpop.eup %2641 }
 0xf2c   :  { %v844_v3 = vmul.f32 %v2642_v62, %v842_v12 }
 0xf8f   :  { %v847_v63 = vpop.permute.xlu0 %846 }
 0xf90   :  { %v849_v2 = vmul.f32 %v2642_v62, %v847_v63 }
 0xf92   :  { %851 = vrot.lane.b32.xlu1 %v849_v2, %s2901_s3 }
0x1004   :  { %v852_v4 = vpop.permute.xlu1 %851 }
0x1005   :  { %v854_v5 = vadd.f32 %v852_v4, %v844_v3 }
0x1007   :  { %2643 = vtanh.f32 %v854_v5  ;;  %v953_v27 = vrot.slane %v854_v5, 6 }
0x1011   :  { %v2644_v6 = vpop.eup %2643 }
0x1012   :  { %857 = vrot.lane.b32.xlu0 %v2644_v6, %s2900_s22 }
0x1084   :  { %v858_v7 = vpop.permute.xlu0 %857 }
0x1085   :  { %v3172_v9 = vmul.f32 %v2642_v62, %v858_v7  ;;  %v2525_v62 = vpack.c.bf16 %v1091_v60, %v1090_v58 }
0x1087   :  { %v866_v10 = vrot.slane %v3172_v9, 2 }
0x1089   :  { %867 = vrot.lane.b32.xlu1 %v866_v10, %s2901_s3  ;;  %v2149_v10 = vld [vmem:[%s3337_s6] ss:$0 sm:$0xff] }
0x10fb   :  { %v868_v13 = vpop.permute.xlu1 %867 }
0x10fc   :  { %2346 = vmatmul.mubr.msk.f32.vlgmr.msra.gmra.mrb[6].mxu1 %vm212_vm3, %v868_v13 }
0x11cf   :  { %v937_v14 = vpop.f32.mrb[6].mxu1 }
0x11d0   :  { %v942_v16 = vrot.slane %v937_v14, 4  ;;  %v2347_v18 = vpop.f32.mrb[7].mxu1 }
0x11d2   :  { %v944_v19 = vadd.f32 %v942_v16, %v3094_v15 }
0x11d4   :  { %2645 = vtanh.f32 %v944_v19  ;;  %v2146_v21 = vmul.f32 -1.442695, %v944_v19 }
0x11d6   :  { %2647 = vpow2.f32 %v2146_v21 }
0x11de   :  { %v2646_v20 = vpop.eup %2645 }
0x11df   :  { %957 = vrot.lane.b32.xlu0 %v2646_v20, %s2900_s22 }
0x11e0   :  { %v2648_v22 = vpop.eup %2647 }
0x11e1   :  { %v948_v23 = vadd.f32 1.0, %v2648_v22 }
0x11e3   :  { %2649 = vrcp.f32 %v948_v23 }
0x11ed   :  { %v2650_v24 = vpop.eup %2649 }
0x11ee   :  { %v955_v28 = vmul.f32 %v2650_v24, %v953_v27 }
0x1251   :  { %v958_v25 = vpop.permute.xlu0 %957 }
0x1252   :  { %v960_v26 = vmul.f32 %v2650_v24, %v958_v25 }
0x1254   :  { %962 = vrot.lane.b32.xlu1 %v960_v26, %s2901_s3 }
0x12c6   :  { %v963_v29 = vpop.permute.xlu1 %962 }
0x12c7   :  { %v965_v30 = vadd.f32 %v963_v29, %v955_v28 }
0x12c9   :  { %2651 = vtanh.f32 %v965_v30 }
0x12d3   :  { %v2652_v31 = vpop.eup %2651 }
0x12d4   :  { %968 = vrot.lane.b32.xlu0 %v2652_v31, %s2900_s22 }
0x1346   :  { %v969_v17 = vpop.permute.xlu0 %968 }
0x1347   :  { %v971_v32 = vmul.f32 %v2650_v24, %v969_v17 }
0x1349   :  { %v977_v34 = vrot.slane %v971_v32, 4 }
0x134b   :  { %978 = vrot.lane.b32.xlu1 %v977_v34, %s2901_s3 }
0x13bd   :  { %v979_v35 = vpop.permute.xlu1 %978 }
0x13be   :  { %2357 = vmatmul.mubr.msk.f32.vlgmr.msra.gmra.mrb[8].mxu0 %vm212_vm3, %v979_v35 }
0x13bf   :  { %2378 = vmatprep.mubr.msk.f32.mxu0 %vm2898_vm0, %v2899_v1  ;;  %2531 = vmatpush3.bf16.msra.mxu0 %v3201_v59 }
0x13c0   :  { %2532 = vmatprep.subr.bf16.mxu0 %v2897_v0 }
0x1491   :  { %v1048_v36 = vpop.f32.mrb[8].mxu0 }
0x1492   :  { %v1053_v37 = vrot.slane %v1048_v36, 2  ;;  %v2358_v38 = vpop.f32.mrb[9].mxu0 }
0x1494   :  { %v1055_v39 = vadd.f32 %v1053_v37, %v3094_v15  ;;  %v1064_v15 = vrot.slane %v965_v30, 6 }
0x1496   :  { %2653 = vtanh.f32 %v1055_v39  ;;  %v2148_v41 = vmul.f32 -1.442695, %v1055_v39 }
0x1498   :  { %2655 = vpow2.f32 %v2148_v41 }
0x14a0   :  { %v2654_v40 = vpop.eup %2653 }
0x14a1   :  { %1068 = vrot.lane.b32.xlu0 %v2654_v40, %s2900_s22 }
0x14a2   :  { %v2656_v42 = vpop.eup %2655 }
0x14a3   :  { %v1059_v43 = vadd.f32 1.0, %v2656_v42 }
0x14a5   :  { %2657 = vrcp.f32 %v1059_v43 }
0x14af   :  { %v2658_v44 = vpop.eup %2657 }
0x14b0   :  { %v1066_v47 = vmul.f32 %v2658_v44, %v1064_v15 }
0x1513   :  { %v1069_v45 = vpop.permute.xlu0 %1068 }
0x1514   :  { %v1071_v46 = vmul.f32 %v2658_v44, %v1069_v45 }
0x1516   :  { %1073 = vrot.lane.b32.xlu1 %v1071_v46, %s2901_s3 }
0x151a   :  { %421 = vrot.lane.b32.xlu1 %v3115_v52, %s2901_s3 }
0x151e   :  { %645 = vrot.lane.b32.xlu1 %v3145_v33, %s2901_s3  ;;  %v1088_v33 = vld [vmem:[#allocation9] sm:$0xff] }
0x151f   :  { %v2521_v55 = vpack.c.bf16 %v1089_v54, %v1088_v33 }
0x1521   :  { %2522 = vmatprep.subr.bf16.mxu1 %v2521_v55 }
0x1522   :  { %973 = vrot.lane.b32.xlu1 %v971_v32, %s2901_s3  ;;  %2524 = vmatpush3.bf16.msra.mxu1 %v2521_v55 }
0x1523   :  { %2526 = vmatprep.subr.bf16.mxu1 %v2525_v62 }
0x1526   :  { %2528 = vmatpush3.bf16.msra.mxu1 %v2525_v62 }
0x1527   :  { %2535 = vmatprep.subr.bf16.mxu1 %v2897_v0 }
0x1588   :  { %v1074_v48 = vpop.permute.xlu1 %1073 }
0x1589   :  { %v1076_v49 = vadd.f32 %v1074_v48, %v1066_v47 }
0x158b   :  { %2659 = vtanh.f32 %v1076_v49 }
0x158c   :  { %v422_v50 = vpop.permute.xlu1 %421 }
0x158d   :  { %425 = vst.msk [vmem:[#allocation2] sm:$0xc] %vm424_vm4, %v422_v50 }
0x1590   :  { %v646_v51 = vpop.permute.xlu1 %645 }
0x1591   :  { %649 = vst.msk [vmem:[#allocation2] sm:$0xc0] %vm648_vm5, %v646_v51 }
0x1594   :  { %v974_v52 = vpop.permute.xlu1 %973 }
0x1595   :  { %v2660_v53 = vpop.eup %2659  ;;  %976 = vst.msk [vmem:[#allocation2 + $0x8] sm:$0x30] %vm536_vm6, %v974_v52 }
0x1596   :  { %1079 = vrot.lane.b32.xlu0 %v2660_v53, %s2900_s22 }
0x159a   :  { %533 = vrot.lane.b32.xlu0 %v3130_v11, %s2901_s3  ;;  %v3204_v11 = vpack.c.bf16 %v1095_v61, %v1094_v8 }
0x159c   :  { %2534 = vmatpush3.bf16.msra.mxu0 %v3204_v11 }
0x159d   :  { %2541 = vmatprep.subr.bf16.mxu0 %v2897_v0 }
0x159e   :  { %862 = vrot.lane.b32.xlu0 %v3172_v9, %s2901_s3 }
0x159f   :  { %2379 = vmatmul.mubr.f32.vlgmr.msra.gmra.mrb[10].mxu0 %v2899_v1 }
0x15a0   :  { %2543 = vmatpush3.bf16.msra.mxu0 %v3201_v59  ;;  %2400 = vmatprep.mubr.msk.f32.mxu0 %vm2898_vm0, %v2899_v1 }
0x15a1   :  { %2544 = vmatprep.subr.bf16.mxu0 %v2897_v0 }
0x15a4   :  { %2546 = vmatpush3.bf16.msra.mxu0 %v3204_v11 }
0x15a5   :  { %2553 = vmatprep.subr.bf16.mxu0 %v2897_v0 }
0x1608   :  { %v1080_v63 = vpop.permute.xlu0 %1079 }
0x1609   :  { %v1082_v2 = vmul.f32 %v2658_v44, %v1080_v63 }
0x160b   :  { %1084 = vrot.lane.b32.xlu0 %v1082_v2, %s2901_s3 }
0x160c   :  { %v534_v12 = vpop.permute.xlu0 %533 }
0x160d   :  { %537 = vst.msk [vmem:[#allocation2] sm:$0x30] %vm536_vm6, %v534_v12 }
0x1610   :  { %v863_v3 = vpop.permute.xlu0 %862 }
0x1611   :  { %865 = vst.msk [vmem:[#allocation2 + $0x8] sm:$0xc] %vm424_vm4, %v863_v3 }
0x1614   :  { %v1097_v4 = vld [vmem:[#allocation2] sm:$0xff] }
0x1615   :  { %2367 = vmatprep.mubr.msk.f32.mxu1 %vm212_vm3, %v1097_v4 }
0x1672   :  { %v1252_v7 = vpop.f32.mrb[10].mxu0 }
0x1673   :  { %v2380_v9 = vpop.f32.mrb[11].mxu0 }
0x167d   :  { %v1085_v5 = vpop.permute.xlu0 %1084 }
0x167e   :  { %1087 = vst.msk [vmem:[#allocation2 + $0x8] sm:$0xc0] %vm648_vm5, %v1085_v5 }
0x1685   :  { %v1098_v6 = vld [vmem:[#allocation2 + $0x8] sm:$0xff] }
0x1686   :  { %2368 = vmatmul.mubr.msk.f32.vlgmr.msra.gmra.mrb[8].mxu1 %vm212_vm3, %v1098_v6 }
0x1687   :  { %2537 = vmatpush3.bf16.msra.mxu1 %v3201_v59  ;;  %2389 = vmatprep.mubr.msk.f32.mxu1 %vm2898_vm0, %v2899_v1 }
0x1688   :  { %2538 = vmatprep.subr.bf16.mxu1 %v2897_v0 }
0x168b   :  { %2540 = vmatpush3.bf16.msra.mxu1 %v3204_v11 }
0x168c   :  { %2547 = vmatprep.subr.bf16.mxu1 %v2897_v0 }
0x1759   :  { %v2369_v13 = vpop.f32.mrb[8].mxu1 }
0x175a   :  { %v3232_v14 = vadd.f32 %v2369_v13, %v2149_v10  ;;  %v1177_v16 = vpop.f32.mrb[9].mxu1 }
0x175b   :  { %v3234_v18 = vadd.f32 %v2149_v10, %v1177_v16 }
0x175d   :  { %v1256_v19 = vadd.f32 %v1252_v7, %v3234_v18 }
0x175f   :  { %2661 = vtanh.f32 %v1256_v19  ;;  %v2152_v21 = vmul.f32 -1.442695, %v1256_v19 }
0x1761   :  { %2663 = vpow2.f32 %v2152_v21 }
0x1769   :  { %v2662_v20 = vpop.eup %2661 }
0x176a   :  { %1266 = vrot.lane.b32.xlu1 %v2662_v20, %s2900_s22 }
0x176b   :  { %v2664_v22 = vpop.eup %2663 }
0x176c   :  { %v1260_v23 = vadd.f32 1.0, %v2664_v22 }
0x176e   :  { %2665 = vrcp.f32 %v1260_v23 }
0x1778   :  { %v2666_v24 = vpop.eup %2665 }
0x1779   :  { %v1264_v27 = vmul.f32 0.0, %v2666_v24 }
0x17dc   :  { %v1267_v25 = vpop.permute.xlu1 %1266 }
0x17dd   :  { %v1269_v26 = vmul.f32 %v2666_v24, %v1267_v25 }
0x17df   :  { %1271 = vrot.lane.b32.xlu0 %v1269_v26, %s2901_s3 }
0x1851   :  { %v1272_v28 = vpop.permute.xlu0 %1271 }
0x1852   :  { %v1274_v29 = vadd.f32 %v1272_v28, %v1264_v27 }
0x1854   :  { %2667 = vtanh.f32 %v1274_v29  ;;  %v1368_v45 = vrot.slane %v1274_v29, 6 }
0x185e   :  { %v2668_v30 = vpop.eup %2667 }
0x185f   :  { %1277 = vrot.lane.b32.xlu1 %v2668_v30, %s2900_s22 }
0x18d1   :  { %v1278_v31 = vpop.permute.xlu1 %1277 }
0x18d2   :  { %v1280_v17 = vmul.f32 %v2666_v24, %v1278_v31 }
0x18d4   :  { %1282 = vrot.lane.b32.xlu0 %v1280_v17, %s2901_s3 }
0x1946   :  { %v1283_v32 = vpop.permute.xlu0 %1282 }
0x1947   :  { %2390 = vmatmul.mubr.msk.f32.vlgmr.msra.gmra.mrb[10].mxu1 %vm212_vm3, %v1283_v32 }
0x1948   :  { %2549 = vmatpush3.bf16.msra.mxu1 %v3201_v59  ;;  %2411 = vmatprep.mubr.msk.f32.mxu1 %vm2898_vm0, %v2899_v1 }
0x1949   :  { %2550 = vmatprep.subr.bf16.mxu1 %v2897_v0 }
0x194c   :  { %2552 = vmatpush3.bf16.msra.mxu1 %v3204_v11 }
0x194d   :  { %2559 = vmatprep.subr.bf16.mxu1 %v2897_v0 }
0x1a1a   :  { %v1352_v34 = vpop.f32.mrb[10].mxu1 }
0x1a1b   :  { %v1357_v35 = vrot.slane %v1352_v34, 6  ;;  %v2391_v36 = vpop.f32.mrb[11].mxu1 }
0x1a1d   :  { %v1359_v37 = vadd.f32 %v1357_v35, %v3234_v18 }
0x1a1f   :  { %2669 = vtanh.f32 %v1359_v37  ;;  %v2154_v39 = vmul.f32 -1.442695, %v1359_v37 }
0x1a21   :  { %2671 = vpow2.f32 %v2154_v39 }
0x1a29   :  { %v2670_v38 = vpop.eup %2669 }
0x1a2a   :  { %1372 = vrot.lane.b32.xlu1 %v2670_v38, %s2900_s22 }
0x1a2b   :  { %v2672_v40 = vpop.eup %2671 }
0x1a2c   :  { %v1363_v41 = vadd.f32 1.0, %v2672_v40 }
0x1a2e   :  { %2673 = vrcp.f32 %v1363_v41 }
0x1a38   :  { %v2674_v42 = vpop.eup %2673 }
0x1a39   :  { %v1370_v46 = vmul.f32 %v2674_v42, %v1368_v45 }
0x1a9c   :  { %v1373_v43 = vpop.permute.xlu1 %1372 }
0x1a9d   :  { %v1375_v44 = vmul.f32 %v2674_v42, %v1373_v43 }
0x1a9f   :  { %1377 = vrot.lane.b32.xlu0 %v1375_v44, %s2901_s3 }
0x1b11   :  { %v1378_v15 = vpop.permute.xlu0 %1377 }
0x1b12   :  { %v1380_v47 = vadd.f32 %v1378_v15, %v1370_v46 }
0x1b14   :  { %2675 = vtanh.f32 %v1380_v47  ;;  %v1475_v63 = vrot.slane %v1380_v47, 6 }
0x1b1e   :  { %v2676_v48 = vpop.eup %2675 }
0x1b1f   :  { %1383 = vrot.lane.b32.xlu1 %v2676_v48, %s2900_s22 }
0x1b91   :  { %v1384_v49 = vpop.permute.xlu1 %1383 }
0x1b92   :  { %v1386_v50 = vmul.f32 %v2674_v42, %v1384_v49 }
0x1b94   :  { %v1388_v51 = vrot.slane %v1386_v50, 2 }
0x1b96   :  { %1389 = vrot.lane.b32.xlu0 %v1388_v51, %s2901_s3 }
0x1c08   :  { %v1390_v52 = vpop.permute.xlu0 %1389 }
0x1c09   :  { %2401 = vmatmul.mubr.msk.f32.vlgmr.msra.gmra.mrb[12].mxu0 %vm212_vm3, %v1390_v52 }
0x1c0a   :  { %2555 = vmatpush3.bf16.msra.mxu0 %v3201_v59  ;;  %2422 = vmatprep.mubr.msk.f32.mxu0 %vm2898_vm0, %v2899_v1 }
0x1c0b   :  { %2556 = vmatprep.subr.bf16.mxu0 %v2897_v0 }
0x1c0e   :  { %2558 = vmatpush3.bf16.msra.mxu0 %v3204_v11 }
0x1c0f   :  { %2565 = vmatprep.subr.bf16.mxu0 %v2897_v0 }
0x1cdc   :  { %v1459_v53 = vpop.f32.mrb[12].mxu0 }
0x1cdd   :  { %v1464_v33 = vrot.slane %v1459_v53, 4  ;;  %v2402_v54 = vpop.f32.mrb[13].mxu0 }
0x1cdf   :  { %v1466_v55 = vadd.f32 %v1464_v33, %v3234_v18 }
0x1ce1   :  { %2677 = vtanh.f32 %v1466_v55  ;;  %v2156_v57 = vmul.f32 -1.442695, %v1466_v55 }
0x1ce3   :  { %2679 = vpow2.f32 %v2156_v57 }
0x1ceb   :  { %v2678_v56 = vpop.eup %2677 }
0x1cec   :  { %1479 = vrot.lane.b32.xlu1 %v2678_v56, %s2900_s22 }
0x1ced   :  { %v2680_v58 = vpop.eup %2679 }
0x1cee   :  { %v1470_v60 = vadd.f32 1.0, %v2680_v58 }
0x1cf0   :  { %2681 = vrcp.f32 %v1470_v60 }
0x1cfa   :  { %v2682_v8 = vpop.eup %2681 }
0x1cfb   :  { %v1477_v2 = vmul.f32 %v2682_v8, %v1475_v63 }
0x1d5e   :  { %v1480_v61 = vpop.permute.xlu1 %1479 }
0x1d5f   :  { %v1482_v62 = vmul.f32 %v2682_v8, %v1480_v61 }
0x1d61   :  { %1484 = vrot.lane.b32.xlu0 %v1482_v62, %s2901_s3 }
0x1dd3   :  { %v1485_v12 = vpop.permute.xlu0 %1484 }
0x1dd4   :  { %v1487_v3 = vadd.f32 %v1485_v12, %v1477_v2 }
0x1dd6   :  { %2683 = vtanh.f32 %v1487_v3  ;;  %v1582_v27 = vrot.slane %v1487_v3, 6 }
0x1de0   :  { %v2684_v4 = vpop.eup %2683 }
0x1de1   :  { %1490 = vrot.lane.b32.xlu1 %v2684_v4, %s2900_s22 }
0x1e53   :  { %v1491_v5 = vpop.permute.xlu1 %1490 }
0x1e54   :  { %v1493_v6 = vmul.f32 %v2682_v8, %v1491_v5 }
0x1e56   :  { %v1495_v7 = vrot.slane %v1493_v6, 4 }
0x1e58   :  { %1496 = vrot.lane.b32.xlu0 %v1495_v7, %s2901_s3 }
0x1eca   :  { %v1497_v9 = vpop.permute.xlu0 %1496 }
0x1ecb   :  { %2412 = vmatmul.mubr.msk.f32.vlgmr.msra.gmra.mrb[12].mxu1 %vm212_vm3, %v1497_v9 }
0x1ecc   :  { %2561 = vmatpush3.bf16.msra.mxu1 %v3201_v59  ;;  %2433 = vmatprep.mubr.msk.f32.mxu1 %vm2898_vm0, %v2899_v1 }
0x1ecd   :  { %2562 = vmatprep.subr.bf16.mxu1 %v2897_v0 }
0x1ed0   :  { %2564 = vmatpush3.bf16.msra.mxu1 %v3204_v11 }
0x1ed1   :  { %2571 = vmatprep.subr.bf16.mxu1 %v2897_v0 }
0x1f9e   :  { %v1566_v10 = vpop.f32.mrb[12].mxu1 }
0x1f9f   :  { %v1571_v13 = vrot.slane %v1566_v10, 2  ;;  %v2413_v16 = vpop.f32.mrb[13].mxu1 }
0x1fa1   :  { %v1573_v19 = vadd.f32 %v1571_v13, %v3234_v18 }
0x1fa3   :  { %2685 = vtanh.f32 %v1573_v19  ;;  %v2158_v21 = vmul.f32 -1.442695, %v1573_v19 }
0x1fa5   :  { %2687 = vpow2.f32 %v2158_v21 }
0x1fad   :  { %v2686_v20 = vpop.eup %2685 }
0x1fae   :  { %1586 = vrot.lane.b32.xlu1 %v2686_v20, %s2900_s22 }
0x1faf   :  { %v2688_v22 = vpop.eup %2687 }
0x1fb0   :  { %v1577_v23 = vadd.f32 1.0, %v2688_v22 }
0x1fb2   :  { %2689 = vrcp.f32 %v1577_v23 }
0x1fbc   :  { %v2690_v24 = vpop.eup %2689 }
0x1fbd   :  { %v1584_v28 = vmul.f32 %v2690_v24, %v1582_v27 }
0x2020   :  { %v1587_v25 = vpop.permute.xlu1 %1586 }
0x2021   :  { %v1589_v26 = vmul.f32 %v2690_v24, %v1587_v25 }
0x2023   :  { %1591 = vrot.lane.b32.xlu0 %v1589_v26, %s2901_s3 }
0x2095   :  { %v1592_v29 = vpop.permute.xlu0 %1591 }
0x2096   :  { %v1594_v30 = vadd.f32 %v1592_v29, %v1584_v28 }
0x2098   :  { %2691 = vtanh.f32 %v1594_v30  ;;  %v1686_v45 = vrot.slane %v1594_v30, 6 }
0x20a2   :  { %v2692_v18 = vpop.eup %2691 }
0x20a3   :  { %1597 = vrot.lane.b32.xlu1 %v2692_v18, %s2900_s22 }
0x2115   :  { %v1598_v31 = vpop.permute.xlu1 %1597 }
0x2116   :  { %v1600_v17 = vmul.f32 %v2690_v24, %v1598_v31 }
0x2118   :  { %v1602_v32 = vrot.slane %v1600_v17, 6 }
0x211a   :  { %1603 = vrot.lane.b32.xlu0 %v1602_v32, %s2901_s3 }
0x218c   :  { %v1604_v34 = vpop.permute.xlu0 %1603 }
0x218d   :  { %2423 = vmatmul.mubr.msk.f32.vlgmr.msra.gmra.mrb[14].mxu0 %vm212_vm3, %v1604_v34 }
0x218e   :  { %2567 = vmatpush3.bf16.msra.mxu0 %v3201_v59  ;;  %2444 = vmatprep.mubr.msk.f32.mxu0 %vm2898_vm0, %v2899_v1 }
0x218f   :  { %2568 = vmatprep.subr.bf16.mxu0 %v2897_v0 }
0x2192   :  { %2570 = vmatpush3.bf16.msra.mxu0 %v3204_v11 }
0x2193   :  { %2577 = vmatprep.subr.bf16.mxu0 %v2897_v0 }
0x2260   :  { %v1673_v35 = vpop.f32.mrb[14].mxu0 }
0x2261   :  { %v1677_v36 = vadd.f32 %v1673_v35, %v3232_v14  ;;  %v2424_v37 = vpop.f32.mrb[15].mxu0 }
0x2263   :  { %2693 = vtanh.f32 %v1677_v36  ;;  %v2160_v39 = vmul.f32 -1.442695, %v1677_v36 }
0x2265   :  { %2695 = vpow2.f32 %v2160_v39 }
0x226d   :  { %v2694_v38 = vpop.eup %2693 }
0x226e   :  { %1690 = vrot.lane.b32.xlu1 %v2694_v38, %s2900_s22 }
0x226f   :  { %v2696_v40 = vpop.eup %2695 }
0x2270   :  { %v1681_v41 = vadd.f32 1.0, %v2696_v40 }
0x2272   :  { %2697 = vrcp.f32 %v1681_v41 }
0x227c   :  { %v2698_v42 = vpop.eup %2697 }
0x227d   :  { %v1688_v46 = vmul.f32 %v2698_v42, %v1686_v45 }
0x22e0   :  { %v1691_v43 = vpop.permute.xlu1 %1690 }
0x22e1   :  { %v1693_v44 = vmul.f32 %v2698_v42, %v1691_v43 }
0x22e3   :  { %1695 = vrot.lane.b32.xlu0 %v1693_v44, %s2901_s3 }
0x2355   :  { %v1696_v15 = vpop.permute.xlu0 %1695 }
0x2356   :  { %v1698_v47 = vadd.f32 %v1696_v15, %v1688_v46  ;;  %v2026_v46 = vld [vmem:[#allocation12 + $0x8] sm:$0xff]  ;;  %v2027_v15 = vld [vmem:[#allocation12 + $0x10] sm:$0xff] }
0x2358   :  { %2699 = vtanh.f32 %v1698_v47 }
0x2362   :  { %v2700_v48 = vpop.eup %2699 }
0x2363   :  { %1701 = vrot.lane.b32.xlu1 %v2700_v48, %s2900_s22  ;;  %v2028_v48 = vld [vmem:[#allocation12 + $0x18] sm:$0xff] }
0x23d5   :  { %v1702_v49 = vpop.permute.xlu1 %1701 }
0x23d6   :  { %v1704_v50 = vmul.f32 %v2698_v42, %v1702_v49  ;;  %v2581_v49 = vpack.c.bf16 %v2028_v48, %v2027_v15 }
0x23d8   :  { %1706 = vrot.lane.b32.xlu0 %v1704_v50, %s2901_s3 }
0x244a   :  { %v1707_v51 = vpop.permute.xlu0 %1706 }
0x244b   :  { %2434 = vmatmul.mubr.msk.f32.vlgmr.msra.gmra.mrb[14].mxu1 %vm212_vm3, %v1707_v51 }
0x244c   :  { %2573 = vmatpush3.bf16.msra.mxu1 %v3201_v59  ;;  %2455 = vmatprep.mubr.msk.f32.mxu1 %vm2898_vm0, %v2899_v1 }
0x244d   :  { %2574 = vmatprep.subr.bf16.mxu1 %v2897_v0 }
0x2450   :  { %2576 = vmatpush3.bf16.msra.mxu1 %v3204_v11  ;;  %v1792_v11 = vrot.slane %v1698_v47, 6 }
0x251e   :  { %v1776_v52 = vpop.f32.mrb[14].mxu1 }
0x251f   :  { %v1781_v53 = vrot.slane %v1776_v52, 6  ;;  %v2435_v33 = vpop.f32.mrb[15].mxu1 }
0x2521   :  { %v1783_v54 = vadd.f32 %v1781_v53, %v3232_v14 }
0x2523   :  { %2701 = vtanh.f32 %v1783_v54  ;;  %v2162_v56 = vmul.f32 -1.442695, %v1783_v54  ;;  %v2167_v54 = vld [vmem:[%s3339_s8] ss:$0 sm:$0xff] }
0x2525   :  { %2703 = vpow2.f32 %v2162_v56 }
0x252d   :  { %v2702_v55 = vpop.eup %2701 }
0x252e   :  { %1796 = vrot.lane.b32.xlu1 %v2702_v55, %s2900_s22 }
0x252f   :  { %v2704_v57 = vpop.eup %2703 }
0x2530   :  { %v1787_v59 = vadd.f32 1.0, %v2704_v57 }
0x2532   :  { %2705 = vrcp.f32 %v1787_v59 }
0x253c   :  { %v2706_v58 = vpop.eup %2705 }
0x253d   :  { %v1794_v61 = vmul.f32 %v2706_v58, %v1792_v11 }
0x25a0   :  { %v1797_v60 = vpop.permute.xlu1 %1796 }
0x25a1   :  { %v1799_v8 = vmul.f32 %v2706_v58, %v1797_v60 }
0x25a3   :  { %1801 = vrot.lane.b32.xlu0 %v1799_v8, %s2901_s3 }
0x2615   :  { %v1802_v62 = vpop.permute.xlu0 %1801 }
0x2616   :  { %v1804_v63 = vadd.f32 %v1802_v62, %v1794_v61 }
0x2618   :  { %2707 = vtanh.f32 %v1804_v63 }
0x2622   :  { %v2708_v2 = vpop.eup %2707 }
0x2623   :  { %1807 = vrot.lane.b32.xlu1 %v2708_v2, %s2900_s22 }
0x2695   :  { %v1808_v12 = vpop.permute.xlu1 %1807 }
0x2696   :  { %v1810_v3 = vmul.f32 %v2706_v58, %v1808_v12 }
0x2698   :  { %v1812_v4 = vrot.slane %v1810_v3, 2 }
0x269a   :  { %1813 = vrot.lane.b32.xlu0 %v1812_v4, %s2901_s3 }
0x270c   :  { %v1814_v5 = vpop.permute.xlu0 %1813 }
0x270d   :  { %2445 = vmatmul.mubr.msk.f32.vlgmr.msra.gmra.mrb[16].mxu0 %vm212_vm3, %v1814_v5 }
0x270e   :  { %2466 = vmatprep.mubr.msk.f32.mxu0 %vm2898_vm0, %v2899_v1  ;;  %v1899_v1 = vrot.slane %v1804_v63, 6 }
0x27e0   :  { %v1883_v6 = vpop.f32.mrb[16].mxu0 }
0x27e1   :  { %v1888_v7 = vrot.slane %v1883_v6, 4  ;;  %v2446_v9 = vpop.f32.mrb[17].mxu0 }
0x27e3   :  { %v1890_v10 = vadd.f32 %v1888_v7, %v3232_v14 }
0x27e5   :  { %2709 = vtanh.f32 %v1890_v10  ;;  %v2164_v16 = vmul.f32 -1.442695, %v1890_v10 }
0x27e7   :  { %2711 = vpow2.f32 %v2164_v16 }
0x27ef   :  { %v2710_v13 = vpop.eup %2709 }
0x27f0   :  { %1903 = vrot.lane.b32.xlu1 %v2710_v13, %s2900_s22 }
0x27f1   :  { %v2712_v19 = vpop.eup %2711 }
0x27f2   :  { %v1894_v20 = vadd.f32 1.0, %v2712_v19 }
0x27f4   :  { %2713 = vrcp.f32 %v1894_v20 }
0x27fe   :  { %v2714_v21 = vpop.eup %2713 }
0x27ff   :  { %v1901_v24 = vmul.f32 %v2714_v21, %v1899_v1 }
0x2862   :  { %v1904_v22 = vpop.permute.xlu1 %1903 }
0x2863   :  { %v1906_v23 = vmul.f32 %v2714_v21, %v1904_v22 }
0x2865   :  { %1908 = vrot.lane.b32.xlu0 %v1906_v23, %s2901_s3 }
0x28d7   :  { %v1909_v25 = vpop.permute.xlu0 %1908 }
0x28d8   :  { %v1911_v26 = vadd.f32 %v1909_v25, %v1901_v24 }
0x28da   :  { %2715 = vtanh.f32 %v1911_v26  ;;  %v2006_v42 = vrot.slane %v1911_v26, 6 }
0x28e4   :  { %v2716_v27 = vpop.eup %2715 }
0x28e5   :  { %1914 = vrot.lane.b32.xlu1 %v2716_v27, %s2900_s22 }
0x2957   :  { %v1915_v28 = vpop.permute.xlu1 %1914 }
0x2958   :  { %v1917_v29 = vmul.f32 %v2714_v21, %v1915_v28 }
0x295a   :  { %v1919_v30 = vrot.slane %v1917_v29, 4 }
0x295c   :  { %1920 = vrot.lane.b32.xlu0 %v1919_v30, %s2901_s3 }
0x29ce   :  { %v1921_v18 = vpop.permute.xlu0 %1920 }
0x29cf   :  { %2456 = vmatmul.mubr.msk.f32.vlgmr.msra.gmra.mrb[16].mxu1 %vm212_vm3, %v1921_v18 }
0x2aa2   :  { %v1990_v31 = vpop.f32.mrb[16].mxu1 }
0x2aa3   :  { %v1995_v17 = vrot.slane %v1990_v31, 2  ;;  %v2457_v32 = vpop.f32.mrb[17].mxu1 }
0x2aa5   :  { %v1997_v34 = vadd.f32 %v1995_v17, %v3232_v14  ;;  %v2025_v14 = vld [vmem:[#allocation12] sm:$0xff] }
0x2aa6   :  { %v2578_v47 = vpack.c.bf16 %v2026_v46, %v2025_v14 }
0x2aa7   :  { %2717 = vtanh.f32 %v1997_v34  ;;  %v2166_v36 = vmul.f32 -1.442695, %v1997_v34 }
0x2aa8   :  { %2579 = vmatpush3.bf16.msra.mxu0 %v2578_v47 }
0x2aa9   :  { %2719 = vpow2.f32 %v2166_v36  ;;  %2580 = vmatprep.subr.bf16.mxu0 %v2897_v0 }
0x2aac   :  { %2582 = vmatpush3.bf16.msra.mxu0 %v2581_v49 }
0x2ab1   :  { %v2718_v35 = vpop.eup %2717 }
0x2ab2   :  { %2010 = vrot.lane.b32.xlu1 %v2718_v35, %s2900_s22 }
0x2ab3   :  { %v2720_v37 = vpop.eup %2719 }
0x2ab4   :  { %v2001_v38 = vadd.f32 1.0, %v2720_v37 }
0x2ab6   :  { %2721 = vrcp.f32 %v2001_v38 }
0x2ac0   :  { %v2722_v39 = vpop.eup %2721 }
0x2ac1   :  { %v2008_v43 = vmul.f32 %v2722_v39, %v2006_v42 }
0x2b24   :  { %v2011_v40 = vpop.permute.xlu1 %2010 }
0x2b25   :  { %v2013_v41 = vmul.f32 %v2722_v39, %v2011_v40 }
0x2b27   :  { %2015 = vrot.lane.b32.xlu0 %v2013_v41, %s2901_s3 }
0x2b99   :  { %v2016_v44 = vpop.permute.xlu0 %2015 }
0x2b9a   :  { %v2018_v45 = vadd.f32 %v2016_v44, %v2008_v43 }
0x2b9c   :  { %2723 = vtanh.f32 %v2018_v45 }
0x2ba6   :  { %v2724_v50 = vpop.eup %2723 }
0x2ba7   :  { %2021 = vrot.lane.b32.xlu1 %v2724_v50, %s2900_s22 }
0x2c19   :  { %v2022_v51 = vpop.permute.xlu1 %2021 }
0x2c1a   :  { %v2024_v52 = vmul.f32 %v2722_v39, %v2022_v51 }
0x2c1c   :  { %v2037_v53 = vrot.slane %v2024_v52, 6 }
0x2c1e   :  { %2038 = vrot.lane.b32.xlu0 %v2037_v53, %s2901_s3 }
0x2c90   :  { %v2039_v33 = vpop.permute.xlu0 %2038 }
0x2c91   :  { %2467 = vmatmul.mubr.msk.f32.vlgmr.msra.gmra.mrb[18].mxu0 %vm212_vm3, %v2039_v33 }
0x2d64   :  { %v2108_v55 = vpop.f32.mrb[18].mxu0 }
0x2d65   :  { %v2109_v0 = vadd.f32 %v2167_v54, %v2108_v55  ;;  %v2468_v56 = vpop.f32.mrb[19].mxu0 }
0x2d67   :  { %2112 = vst [vmem:[#allocation14] sm:$0x3] %v2109_v0 }
0x2d68   :  { %2868 = shalt.err (!%p2865_p10)
}
0x2d69   :  { %s2869_s4 = scalar_lea.hbm %s3340_s9, 32 }
0x2d6a   :  { %p2870_p11 = scmp.ne.s32.totalorder %s3340_s9, %s2869_s4  ;;  %p2873_p12 = scmp.lt.u32.totalorder %s2869_s4, %s3340_s9 }
0x2d6c   :  { %p2875_p13 = pnand %p2873_p12, %p2870_p11 }
0x2d6e   :  { %2878 = shalt.err (!%p2875_p13)
}
0x2d6f   :  { %2122 = dma.vmem_to_hbm [thread:$0]  %s2120_s23, 32, %s3340_s9, [#allocation5]  }
0x2d70   :  { %2887 = dma.done.wait [#allocation5], 32  }
0x2d71   :  { %2888 = vsyncadd [#allocation5], 4294967264 }
0x2d72   :  { %2126 = vsyncpa [#allocation4], 1 }
0x2d73   :  { %2127 = vsyncpa [#allocation7], 1 }
0x2d74   :  { %2128 = vsyncpa [#allocation10], 1 }
0x2d75   :  { %2129 = vsyncpa [#allocation13], 1 }
0x2d76   :  { %2130 = vsyncpa [#allocation5], 1 }

</bundles_post_ra>
